<compile_context>
chip_gen: v7x
topology: tpu7x:2x2x1
jax: 0.10.0
libtpu: 0.0.40
codegen_flags: <defaults>
</compile_context>

<pallas_src>
import functools

import jax
import jax.numpy as jnp
from jax.experimental import pallas as pl
from jax.experimental.pallas import tpu as pltpu

_TB = 256          # batch tile: multiple of 16 -> clean bf16 sublane packing on all chips
_D_IN = 128
_D_H1 = 512
_D_H2 = 64
_D_OUT = 5
_D_OUT_PAD = 128   # lane-dense padded output width


def _discriminator_kernel(x_ref, w1_ref, b1_ref, w2_ref, b2_ref, w3_ref, b3_ref, o_ref):
    # x:  (TB, 128)  bf16        w1: (128, 512) bf16   b1: (1, 512) f32
    # w2: (512, 64)  bf16        b2: (1, 64)    f32
    # w3: (64, 128)  bf16 (cols 5:128 zero-padded)     b3: (1, 128) f32 (padded)
    # o:  (TB, 128)  f32 lane-dense; real logits live in o[:, :5]
    x = x_ref[...]

    h1 = jnp.dot(x, w1_ref[...], preferred_element_type=jnp.float32) + b1_ref[...]
    # Dropout(0.5) -> identity in eval mode.
    h2 = jnp.dot(h1.astype(jnp.bfloat16), w2_ref[...],
                 preferred_element_type=jnp.float32) + b2_ref[...]
    # Dropout(0.5) -> identity in eval mode.
    out = jnp.dot(h2.astype(jnp.bfloat16), w3_ref[...],
                  preferred_element_type=jnp.float32) + b3_ref[...]

    o_ref[...] = out.astype(o_ref.dtype)


@functools.partial(jax.jit, static_argnames=("tb",))
def discriminator_forward(x, w1, b1, w2, b2, w3, b3, *, tb=_TB):
    B, d_in = x.shape
    assert d_in == _D_IN, d_in

    b_pad = ((B + tb - 1) // tb) * tb
    n_tiles = b_pad // tb

    # bf16 weights/activations (f32 MXU accumulation), biases kept in f32.
    x_p = jnp.zeros((b_pad, _D_IN), jnp.bfloat16).at[:B].set(x.astype(jnp.bfloat16))
    w1_b = w1.astype(jnp.bfloat16)
    w2_b = w2.astype(jnp.bfloat16)
    b1_f = b1.reshape(1, _D_H1).astype(jnp.float32)
    b2_f = b2.reshape(1, _D_H2).astype(jnp.float32)
    # Lane-dense last layer: pad 5 -> 128 output columns (padded columns are exact zeros).
    w3_p = jnp.zeros((_D_H2, _D_OUT_PAD), jnp.bfloat16).at[:, :_D_OUT].set(w3.astype(jnp.bfloat16))
    b3_p = jnp.zeros((1, _D_OUT_PAD), jnp.float32).at[:, :_D_OUT].set(
        b3.reshape(1, _D_OUT).astype(jnp.float32))

    # Weights/biases: constant block index -> Pallas keeps them resident across the batch grid.
    resident = lambda shape: pl.BlockSpec(shape, lambda i: tuple(0 for _ in shape))

    cost = pl.CostEstimate(
        flops=2 * b_pad * (_D_IN * _D_H1 + _D_H1 * _D_H2 + _D_H2 * _D_OUT_PAD),
        transcendentals=0,
        bytes_accessed=(x_p.size * 2 + w1_b.size * 2 + w2_b.size * 2 + w3_p.size * 2
                        + b1_f.size * 4 + b2_f.size * 4 + b3_p.size * 4
                        + b_pad * _D_OUT_PAD * 4),
    )

    out_p = pl.pallas_call(
        _discriminator_kernel,
        out_shape=jax.ShapeDtypeStruct((b_pad, _D_OUT_PAD), jnp.float32),
        grid_spec=pltpu.PrefetchScalarGridSpec(
            num_scalar_prefetch=0,
            grid=(n_tiles,),
            in_specs=[
                pl.BlockSpec((tb, _D_IN), lambda i: (i, 0)),      # pipelined activation stream
                resident((_D_IN, _D_H1)), resident((1, _D_H1)),
                resident((_D_H1, _D_H2)), resident((1, _D_H2)),
                resident((_D_H2, _D_OUT_PAD)), resident((1, _D_OUT_PAD)),
            ],
            out_specs=pl.BlockSpec((tb, _D_OUT_PAD), lambda i: (i, 0)),
        ),
        compiler_params=pltpu.CompilerParams(
            dimension_semantics=("parallel",),   # megacore-shard the batch axis on v7x
        ),
        cost_estimate=cost,
    )(x_p, w1_b, b1_f, w2_b, b2_f, w3_p, b3_p)

    # Strip batch padding and the lane-dense column padding.
    return out_p[:B, :_D_OUT]


def _init_linear_params(key, in_features, out_features):
    """Deterministic init mimicking torch.nn.Linear default (Kaiming-uniform-ish)."""
    kw, kb = jax.random.split(key)
    bound = 1.0 / jnp.sqrt(jnp.float32(in_features))
    # Stored as (in_features, out_features) so the kernel does x @ W (== x @ W_pt.T).
    w = jax.random.uniform(kw, (in_features, out_features), jnp.float32, -bound, bound)
    b = jax.random.uniform(kb, (1, out_features), jnp.float32, -bound, bound)
    return w, b


def _reference_forward(x, w1, b1, w2, b2, w3, b3):
    # Pure-JAX reference mirroring the kernel's bf16-input / f32-accumulate numerics.
    bf = jnp.bfloat16
    h1 = jnp.dot(x.astype(bf), w1.astype(bf), preferred_element_type=jnp.float32) + b1
    h2 = jnp.dot(h1.astype(bf), w2.astype(bf), preferred_element_type=jnp.float32) + b2
    return jnp.dot(h2.astype(bf), w3.astype(bf), preferred_element_type=jnp.float32) + b3


if __name__ == "__main__":
    key = jax.random.PRNGKey(0)
    k_x, k1, k2, k3 = jax.random.split(key, 4)

    B = 300  # not a tile multiple: exercises batch padding and a 2-step pipelined grid
    x = jax.random.normal(k_x, (B, _D_IN), dtype=jnp.float32)

    w1, b1 = _init_linear_params(k1, _D_IN, _D_H1)
    w2, b2 = _init_linear_params(k2, _D_H1, _D_H2)
    w3, b3 = _init_linear_params(k3, _D_H2, _D_OUT)

    out = discriminator_forward(x, w1, b1, w2, b2, w3, b3)
    out = jax.block_until_ready(out)

    ref = _reference_forward(x, w1, b1, w2, b2, w3, b3)
    assert out.shape == (B, _D_OUT), out.shape
    assert jnp.allclose(out, ref, atol=1e-2, rtol=1e-2), "mismatch vs. pure-JAX reference"

    print("KERNEL_OK")
</pallas_src>

<mosaic_0001>
module attributes {stable_mosaic.version = 11 : i64} {
  func.func @_discriminator_kernel(%arg0: i32, %arg1: memref<256x128xbf16, #tpu.memory_space<vmem>>, %arg2: memref<128x512xbf16, #tpu.memory_space<vmem>>, %arg3: memref<1x512xf32, #tpu.memory_space<vmem>>, %arg4: memref<512x64xbf16, #tpu.memory_space<vmem>>, %arg5: memref<1x64xf32, #tpu.memory_space<vmem>>, %arg6: memref<64x128xbf16, #tpu.memory_space<vmem>>, %arg7: memref<1x128xf32, #tpu.memory_space<vmem>>, %arg8: memref<256x128xf32, #tpu.memory_space<vmem>>) attributes {dimension_semantics = [#tpu.dimension_semantics<parallel>], iteration_bounds = array<i64: 2>, scalar_prefetch = 0 : i64, scratch_operands = 0 : i64, tpu.core_type = #tpu.core_type<tc>, window_params = [{transform_indices = @transform_0, window_bounds = array<i64: 256, 128>}, {pipeline_mode = #tpu.pipeline_mode<synchronous>, transform_indices = @transform_1, window_bounds = array<i64: 128, 512>}, {pipeline_mode = #tpu.pipeline_mode<synchronous>, transform_indices = @transform_2, window_bounds = array<i64: 1, 512>}, {pipeline_mode = #tpu.pipeline_mode<synchronous>, transform_indices = @transform_3, window_bounds = array<i64: 512, 64>}, {pipeline_mode = #tpu.pipeline_mode<synchronous>, transform_indices = @transform_4, window_bounds = array<i64: 1, 64>}, {pipeline_mode = #tpu.pipeline_mode<synchronous>, transform_indices = @transform_5, window_bounds = array<i64: 64, 128>}, {pipeline_mode = #tpu.pipeline_mode<synchronous>, transform_indices = @transform_6, window_bounds = array<i64: 1, 128>}, {transform_indices = @transform_7, window_bounds = array<i64: 256, 128>}]} {
    %c0 = arith.constant 0 : index
    %c0_0 = arith.constant 0 : index
    %0 = vector.load %arg1[%c0, %c0_0] : memref<256x128xbf16, #tpu.memory_space<vmem>>, vector<256x128xbf16>
    %c0_1 = arith.constant 0 : index
    %c0_2 = arith.constant 0 : index
    %1 = vector.load %arg2[%c0_1, %c0_2] : memref<128x512xbf16, #tpu.memory_space<vmem>>, vector<128x512xbf16>
    %cst = arith.constant dense<0.000000e+00> : vector<256x512xf32>
    %2 = tpu.matmul %0, %1, %cst {dimension_numbers = #tpu.dot_dimension_numbers<[1], [0], [0], [1], [0, 0, 1, 1], [], []>} : vector<256x128xbf16>, vector<128x512xbf16>, vector<256x512xf32> -> vector<256x512xf32>
    %c0_3 = arith.constant 0 : index
    %c0_4 = arith.constant 0 : index
    %3 = vector.load %arg3[%c0_3, %c0_4] : memref<1x512xf32, #tpu.memory_space<vmem>>, vector<1x512xf32>
    %4 = vector.broadcast %3 : vector<1x512xf32> to vector<256x512xf32>
    %5 = arith.addf %2, %4 : vector<256x512xf32>
    %6 = arith.truncf %5 : vector<256x512xf32> to vector<256x512xbf16>
    %c0_5 = arith.constant 0 : index
    %c0_6 = arith.constant 0 : index
    %7 = vector.load %arg4[%c0_5, %c0_6] : memref<512x64xbf16, #tpu.memory_space<vmem>>, vector<512x64xbf16>
    %cst_7 = arith.constant dense<0.000000e+00> : vector<256x64xf32>
    %8 = tpu.matmul %6, %7, %cst_7 {dimension_numbers = #tpu.dot_dimension_numbers<[1], [0], [0], [1], [0, 0, 1, 1], [], []>} : vector<256x512xbf16>, vector<512x64xbf16>, vector<256x64xf32> -> vector<256x64xf32>
    %c0_8 = arith.constant 0 : index
    %c0_9 = arith.constant 0 : index
    %9 = vector.load %arg5[%c0_8, %c0_9] : memref<1x64xf32, #tpu.memory_space<vmem>>, vector<1x64xf32>
    %10 = vector.broadcast %9 : vector<1x64xf32> to vector<256x64xf32>
    %11 = arith.addf %8, %10 : vector<256x64xf32>
    %12 = arith.truncf %11 : vector<256x64xf32> to vector<256x64xbf16>
    %c0_10 = arith.constant 0 : index
    %c0_11 = arith.constant 0 : index
    %13 = vector.load %arg6[%c0_10, %c0_11] : memref<64x128xbf16, #tpu.memory_space<vmem>>, vector<64x128xbf16>
    %cst_12 = arith.constant dense<0.000000e+00> : vector<256x128xf32>
    %14 = tpu.matmul %12, %13, %cst_12 {dimension_numbers = #tpu.dot_dimension_numbers<[1], [0], [0], [1], [0, 0, 1, 1], [], []>} : vector<256x64xbf16>, vector<64x128xbf16>, vector<256x128xf32> -> vector<256x128xf32>
    %c0_13 = arith.constant 0 : index
    %c0_14 = arith.constant 0 : index
    %15 = vector.load %arg7[%c0_13, %c0_14] : memref<1x128xf32, #tpu.memory_space<vmem>>, vector<1x128xf32>
    %16 = vector.broadcast %15 : vector<1x128xf32> to vector<256x128xf32>
    %17 = arith.addf %14, %16 : vector<256x128xf32>
    %c0_15 = arith.constant 0 : index
    %c0_16 = arith.constant 0 : index
    %18 = vector.load %arg8[%c0_15, %c0_16] : memref<256x128xf32, #tpu.memory_space<vmem>>, vector<256x128xf32>
    tpu.vector_store %arg8[%c0_15, %c0_16], %17 {strides = array<i32>} : memref<256x128xf32, #tpu.memory_space<vmem>>, vector<256x128xf32>,
    return
  }
  func.func @transform_0(%arg0: i32) -> (i32, i32) {
    %c0_i32 = arith.constant 0 : i32
    %c0_i32_0 = arith.constant 0 : i32
    return %arg0, %c0_i32 : i32, i32
  }
  func.func @transform_1(%arg0: i32) -> (i32, i32) {
    %c0_i32 = arith.constant 0 : i32
    %c0_i32_0 = arith.constant 0 : i32
    %c0_i32_1 = arith.constant 0 : i32
    return %c0_i32, %c0_i32_0 : i32, i32
  }
  func.func @transform_2(%arg0: i32) -> (i32, i32) {
    %c0_i32 = arith.constant 0 : i32
    %c0_i32_0 = arith.constant 0 : i32
    %c0_i32_1 = arith.constant 0 : i32
    return %c0_i32, %c0_i32_0 : i32, i32
  }
  func.func @transform_3(%arg0: i32) -> (i32, i32) {
    %c0_i32 = arith.constant 0 : i32
    %c0_i32_0 = arith.constant 0 : i32
    %c0_i32_1 = arith.constant 0 : i32
    return %c0_i32, %c0_i32_0 : i32, i32
  }
  func.func @transform_4(%arg0: i32) -> (i32, i32) {
    %c0_i32 = arith.constant 0 : i32
    %c0_i32_0 = arith.constant 0 : i32
    %c0_i32_1 = arith.constant 0 : i32
    return %c0_i32, %c0_i32_0 : i32, i32
  }
  func.func @transform_5(%arg0: i32) -> (i32, i32) {
    %c0_i32 = arith.constant 0 : i32
    %c0_i32_0 = arith.constant 0 : i32
    %c0_i32_1 = arith.constant 0 : i32
    return %c0_i32, %c0_i32_0 : i32, i32
  }
  func.func @transform_6(%arg0: i32) -> (i32, i32) {
    %c0_i32 = arith.constant 0 : i32
    %c0_i32_0 = arith.constant 0 : i32
    %c0_i32_1 = arith.constant 0 : i32
    return %c0_i32, %c0_i32_0 : i32, i32
  }
  func.func @transform_7(%arg0: i32) -> (i32, i32) {
    %c0_i32 = arith.constant 0 : i32
    %c0_i32_0 = arith.constant 0 : i32
    return %arg0, %c0_i32 : i32, i32
  }
}

</mosaic_0001>

<bundles_post_ra>
// kernel: discriminator_forward.1
= control target key start
LH: loop header
LB: loop body
LE: loop exit
PB: predicated region body
PF: predicated region fallthrough
CT: control target
= control target key end

     0   :  { %s2584_s24 = smov 0   ;;  %s3305_s0 = inlined_call_operand.vmem [shape: bf16[512,128], index: 0, kind: input, shape index: {}]   ;;  %s3306_s1 = inlined_call_operand.vmem [shape: bf16[128,512], index: 1, kind: input, shape index: {}]   ;;  %s3307_s2 = inlined_call_operand.vmem [shape: f32[1,512], index: 2, kind: input, shape index: {}]   ;;  %s3308_s3 = inlined_call_operand.vmem [shape: bf16[512,64], index: 3, kind: input, shape index: {}]   ;;  %s3309_s4 = inlined_call_operand.vmem [shape: f32[1,64], index: 4, kind: input, shape index: {}]   ;;  %s3310_s5 = inlined_call_operand.vmem [shape: bf16[64,128], index: 5, kind: input, shape index: {}]   ;;  %s3311_s6 = inlined_call_operand.vmem [shape: f32[1,128], index: 6, kind: input, shape index: {}]   ;;  %s3312_s7 = inlined_call_operand.vmem [shape: f32[512,128], index: 7, kind: output, shape index: {}]  }
   0x1 LB: > { %s2013_s25 = sadd.s32 4294967295, %s2541_s24   ;;  %p2017_p0 = scmp.ge.s32.totalorder %s2541_s24, 1  ;;  %s2541_s24 = sphi %s2584_s24, %s17_s24  }
   0x2   : > { %p238_p1 = scmp.lt.s32.totalorder %s2541_s24, 3 }
   0x4   : > { %p239_p2 = pnand %p2017_p0, %p238_p1 }
   0x5   : > { %v2435_v0 = vld [vmem:[%s3306_s1 + $0x4] ss:$16 sps:$4 sm:$0xff] (!%p239_p2)   ;;  %s2018_s28 = sshll.u32 (!%p239_p2), %s2013_s25, 5  ;;  %v2437_v1 = vld [vmem:[%s3306_s1] ss:$16 sps:$4 sm:$0xff] (!%p239_p2)   ;;  %v2543_v2 = vmov (!%p239_p2), 0  }
   0x6   : > { %242 = sbr.rel (%p239_p2) target bundleno = 850 (0x352), region = 48  ;;  %657 = vmatprep.mubr.bf16.mxu0 (!%p239_p2), %v2543_v2  ;;  %777 = vmatprep.mubr.bf16.mxu1 (!%p239_p2), %v2543_v2  ;;  %p271_p3 = scmp.lt.s32.totalorder (!%p239_p2), %s2018_s28, 63  ;;  %v2438_v3 = vld [vmem:[%s3306_s1 + $0x24] ss:$16 sps:$4 sm:$0xff] (!%p239_p2)   ;;  %v2440_v4 = vld [vmem:[%s3306_s1 + $0x20] ss:$16 sps:$4 sm:$0xff] (!%p239_p2)  }
   0x7   : > { %625 = vmatprep.subr.bf16.mxu0 (!%p239_p2), %v2435_v0  ;;  %2410 = vmatprep.subr.bf16.mxu1 (!%p239_p2), %v2435_v0  ;;  %v2441_v5 = vld [vmem:[%s3306_s1 + $0x44] ss:$16 sps:$4 sm:$0xff] (!%p239_p2)   ;;  %v2443_v6 = vld [vmem:[%s3306_s1 + $0x40] ss:$16 sps:$4 sm:$0xff] (!%p239_p2)   ;;  %v2463_v17 = vld [vmem:[%s3306_s1 + $0xc] ss:$16 sps:$4 sm:$0xff] (!%p239_p2)  }
   0x8   : > { %626 = vmatpush1.bf16.msra.mxu0 (!%p239_p2), %v2437_v1  ;;  %2418 = vmatpush1.bf16.msra.mxu1 (!%p239_p2), %v2437_v1  ;;  %v2444_v7 = vld [vmem:[%s3306_s1 + $0x64] ss:$16 sps:$4 sm:$0xff] (!%p239_p2)   ;;  %v2446_v8 = vld [vmem:[%s3306_s1 + $0x60] ss:$16 sps:$4 sm:$0xff] (!%p239_p2)   ;;  %v2461_v20 = vld [vmem:[%s3306_s1 + $0x8] ss:$16 sps:$4 sm:$0xff] (!%p239_p2)  }
   0x9   : > { %627 = vmatprep.subr.bf16.mxu0 (!%p239_p2), %v2438_v3  ;;  %2411 = vmatprep.subr.bf16.mxu1 (!%p239_p2), %v2438_v3  ;;  %v2447_v9 = vld [vmem:[%s3306_s1 + $0x84] ss:$16 sps:$4 sm:$0xff] (!%p239_p2)   ;;  %v2449_v10 = vld [vmem:[%s3306_s1 + $0x80] ss:$16 sps:$4 sm:$0xff] (!%p239_p2)   ;;  %v2466_v21 = vld [vmem:[%s3306_s1 + $0x2c] ss:$16 sps:$4 sm:$0xff] (!%p239_p2)  }
   0xa   : > { %v2450_v11 = vld [vmem:[%s3306_s1 + $0xa4] ss:$16 sps:$4 sm:$0xff] (!%p239_p2)   ;;  %v2452_v12 = vld [vmem:[%s3306_s1 + $0xa0] ss:$16 sps:$4 sm:$0xff] (!%p239_p2)   ;;  %v2464_v22 = vld [vmem:[%s3306_s1 + $0x28] ss:$16 sps:$4 sm:$0xff] (!%p239_p2)  }
   0xb   : > { %v2453_v13 = vld [vmem:[%s3306_s1 + $0xc4] ss:$16 sps:$4 sm:$0xff] (!%p239_p2)   ;;  %v2455_v14 = vld [vmem:[%s3306_s1 + $0xc0] ss:$16 sps:$4 sm:$0xff] (!%p239_p2)   ;;  %v2471_v24 = vld [vmem:[%s3306_s1 + $0x4c] ss:$16 sps:$4 sm:$0xff] (!%p239_p2)  }
   0xc   : > { %628 = vmatpush1.bf16.msra.mxu0 (!%p239_p2), %v2440_v4  ;;  %2419 = vmatpush1.bf16.msra.mxu1 (!%p239_p2), %v2440_v4  ;;  %v2456_v15 = vld [vmem:[%s3306_s1 + $0xe4] ss:$16 sps:$4 sm:$0xff] (!%p239_p2)   ;;  %v2458_v16 = vld [vmem:[%s3306_s1 + $0xe0] ss:$16 sps:$4 sm:$0xff] (!%p239_p2)   ;;  %v2469_v26 = vld [vmem:[%s3306_s1 + $0x48] ss:$16 sps:$4 sm:$0xff] (!%p239_p2)  }
   0xd   : > { %s3314_s28 = smov (!%p271_p3, %s2018_s28), 63  ;;  %629 = vmatprep.subr.bf16.mxu0 %v2441_v5  ;;  %2412 = vmatprep.subr.bf16.mxu1 %v2441_v5  ;;  %v2474_v27 = vld [vmem:[%s3306_s1 + $0x6c] ss:$16 sps:$4 sm:$0xff]   ;;  %v2472_v28 = vld [vmem:[%s3306_s1 + $0x68] ss:$16 sps:$4 sm:$0xff]   ;;  %v2503_v40 = vld [vmem:[%s3308_s3 + $0x40] sm:$0xff]  }
   0xe   : > { %s2019_s14 = sshll.u32 %s3314_s28, 2  ;;  %v2479_v29 = vld [vmem:[%s3306_s1 + $0x8c] ss:$16 sps:$4 sm:$0xff]   ;;  %v2477_v32 = vld [vmem:[%s3306_s1 + $0x88] ss:$16 sps:$4 sm:$0xff]   ;;  %v2504_v41 = vld [vmem:[%s3308_s3] sm:$0xff]  }
   0xf   : > { %s2621_s21 = scalar_lea.vmem %s3305_s0, %s2019_s14  ;;  %v2482_v33 = vld [vmem:[%s3306_s1 + $0xac] ss:$16 sps:$4 sm:$0xff]   ;;  %v2480_v34 = vld [vmem:[%s3306_s1 + $0xa8] ss:$16 sps:$4 sm:$0xff]   ;;  %v2499_v44 = vld [vmem:[%s3308_s3 + $0xc0] sm:$0xff]   ;;  %vm1715_vm0 = vcmask 523264  }
  0x10   : > { %630 = vmatpush1.bf16.msra.mxu0 %v2443_v6  ;;  %2420 = vmatpush1.bf16.msra.mxu1 %v2443_v6  ;;  %v2654_v18 = vld [vmem:[%s2621_s21] sm:$0xff]   ;;  %v2673_v23 = vld [vmem:[%s2621_s21 + $0x8] sm:$0xff]   ;;  %v2698_v30 = vld [vmem:[%s2621_s21 + $0x10] sm:$0xff]   ;;  %s2021_s29 = sshll.u32 %s3314_s28, 3 }
  0x11   : > { %631 = vmatprep.subr.bf16.mxu0 %v2444_v7  ;;  %2413 = vmatprep.subr.bf16.mxu1 %v2444_v7  ;;  %v2657_v19 = vld [vmem:[%s2621_s21 + $0x60] sm:$0xff]   ;;  %v2679_v25 = vld [vmem:[%s2621_s21 + $0x68] sm:$0xff]   ;;  %v2701_v31 = vld [vmem:[%s2621_s21 + $0x70] sm:$0xff]   ;;  %s3236_s10 = scalar_lea.vmem %s3312_s7, %s2021_s29 }
  0x12   : > { %v2487_v35 = vld [vmem:[%s3306_s1 + $0xcc] ss:$16 sps:$4 sm:$0xff]   ;;  %v2485_v38 = vld [vmem:[%s3306_s1 + $0xc8] ss:$16 sps:$4 sm:$0xff]   ;;  %v2751_v45 = vld [vmem:[%s2621_s21 + $0x20] sm:$0xff]  }
  0x13   : > { %v2720_v36 = vld [vmem:[%s2621_s21 + $0x18] sm:$0xff]   ;;  %v2507_v43 = vld [vmem:[%s3308_s3 + $0x48] sm:$0xff]   ;;  %v2500_v46 = vld [vmem:[%s3308_s3 + $0x80] sm:$0xff]  }
  0x14   : > { %632 = vmatpush1.bf16.msra.mxu0 %v2446_v8  ;;  %2421 = vmatpush1.bf16.msra.mxu1 %v2446_v8  ;;  %v2723_v37 = vld [vmem:[%s2621_s21 + $0x78] sm:$0xff]   ;;  %v2501_v47 = vld [vmem:[%s3308_s3 + $0xc8] sm:$0xff]   ;;  %v2511_v49 = vld [vmem:[%s3308_s3 + $0x50] sm:$0xff]  }
  0x15   : > { %633 = vmatprep.subr.bf16.mxu0 %v2447_v9  ;;  %2414 = vmatprep.subr.bf16.mxu1 %v2447_v9  ;;  %v2490_v39 = vld [vmem:[%s3306_s1 + $0xec] ss:$16 sps:$4 sm:$0xff]   ;;  %v2488_v42 = vld [vmem:[%s3306_s1 + $0xe8] ss:$16 sps:$4 sm:$0xff]   ;;  %v2512_v51 = vld [vmem:[%s3308_s3 + $0x10] sm:$0xff]  }
  0x16   : > { %v2508_v48 = vld [vmem:[%s3308_s3 + $0x8] sm:$0xff]   ;;  %v2505_v52 = vld [vmem:[%s3308_s3 + $0xd0] sm:$0xff]   ;;  %v2515_v53 = vld [vmem:[%s3308_s3 + $0x58] sm:$0xff]  }
  0x17   : > { %v2502_v50 = vld [vmem:[%s3308_s3 + $0x88] sm:$0xff]   ;;  %v2506_v55 = vld [vmem:[%s3308_s3 + $0x90] sm:$0xff]   ;;  %v2516_v56 = vld [vmem:[%s3308_s3 + $0x18] sm:$0xff]  }
  0x18   : > { %634 = vmatpush1.bf16.msra.mxu0 %v2449_v10  ;;  %2422 = vmatpush1.bf16.msra.mxu1 %v2449_v10  ;;  %v2492_v54 = vld [vmem:[%s2621_s21 + $0x28] sm:$0xff]   ;;  %v2509_v57 = vld [vmem:[%s3308_s3 + $0xd8] sm:$0xff]   ;;  %v2517_v58 = vld [vmem:[%s3308_s3 + $0x60] sm:$0xff]  }
  0x19   : > { %635 = vmatprep.subr.bf16.mxu0 %v2450_v11  ;;  %2415 = vmatprep.subr.bf16.mxu1 %v2450_v11  ;;  %v2510_v59 = vld [vmem:[%s3308_s3 + $0x98] sm:$0xff]   ;;  %v2518_v60 = vld [vmem:[%s3308_s3 + $0x20] sm:$0xff]   ;;  %v2521_v62 = vld [vmem:[%s3308_s3 + $0x68] sm:$0xff]  }
  0x1a   : > { %v2513_v61 = vld [vmem:[%s3308_s3 + $0xe0] sm:$0xff]   ;;  %v2493_v63 = vld [vmem:[%s2621_s21 + $0x30] sm:$0xff]   ;;  %v2522_v1 = vld [vmem:[%s3308_s3 + $0x28] sm:$0xff]  }
  0x1b   : > { %v2514_v0 = vld [vmem:[%s3308_s3 + $0xa0] sm:$0xff]   ;;  %v2519_v3 = vld [vmem:[%s3308_s3 + $0xe8] sm:$0xff]   ;;  %v2494_v5 = vld [vmem:[%s2621_s21 + $0x38] sm:$0xff]  }
  0x1c   : > { %636 = vmatpush1.bf16.msra.mxu0 %v2452_v12  ;;  %2423 = vmatpush1.bf16.msra.mxu1 %v2452_v12  ;;  %v2520_v4 = vld [vmem:[%s3308_s3 + $0xa8] sm:$0xff]   ;;  %v2495_v6 = vld [vmem:[%s2621_s21 + $0x40] sm:$0xff]   ;;  %v2497_v8 = vld [vmem:[%s2621_s21 + $0x50] sm:$0xff]  }
  0x1d   : > { %637 = vmatprep.subr.bf16.mxu0 %v2453_v13  ;;  %2416 = vmatprep.subr.bf16.mxu1 %v2453_v13  ;;  %v2496_v7 = vld [vmem:[%s2621_s21 + $0x48] sm:$0xff]   ;;  %v2523_v9 = vld [vmem:[%s3308_s3 + $0x70] sm:$0xff]   ;;  %v2498_v11 = vld [vmem:[%s2621_s21 + $0x58] sm:$0xff]  }
  0x1e   : > { %v2524_v10 = vld [vmem:[%s3308_s3 + $0x30] sm:$0xff]   ;;  %v2525_v12 = vld [vmem:[%s3308_s3 + $0x78] sm:$0xff]  }
  0x1f   : > { %v2526_v13 = vld [vmem:[%s3308_s3 + $0x38] sm:$0xff]  }
  0x20   : > { %638 = vmatpush1.bf16.msra.mxu0 %v2455_v14  ;;  %2424 = vmatpush1.bf16.msra.mxu1 %v2455_v14  ;;  %v2527_v14 = vld [vmem:[%s3308_s3 + $0xf0] sm:$0xff]  }
  0x21   : > { %639 = vmatprep.subr.bf16.mxu0 %v2456_v15  ;;  %2417 = vmatprep.subr.bf16.mxu1 %v2456_v15  ;;  %v2528_v15 = vld [vmem:[%s3308_s3 + $0xb0] sm:$0xff]  }
  0x24   : > { %640 = vmatpush1.bf16.msra.mxu0 %v2458_v16  ;;  %2425 = vmatpush1.bf16.msra.mxu1 %v2458_v16  ;;  %v2529_v16 = vld [vmem:[%s3308_s3 + $0xf8] sm:$0xff]  }
  0x25   : > { %818 = vmatprep.subr.bf16.mxu1 %v2463_v17  ;;  %2126 = vmatprep.subr.bf16.mxu0 %v2503_v40  ;;  %v2530_v17 = vld [vmem:[%s3308_s3 + $0xb8] sm:$0xff]  }
  0x27   : > { %658 = vmatmul.mubr.bf16.vlgmr.msra.gmra.mrb[0].mxu0 %v2654_v18  ;;  %778 = vmatmul.mubr.bf16.vlgmr.msra.gmra.mrb[0].mxu1 %v2657_v19 }
  0x28   : > { %819 = vmatpush1.bf16.msra.mxu1 %v2461_v20  ;;  %667 = vmatprep.mubr.bf16.mxu0 %v2543_v2 }
  0x29   : > { %820 = vmatprep.subr.bf16.mxu1 %v2466_v21  ;;  %787 = vmatprep.mubr.bf16.mxu1 %v2543_v2 }
  0x2a   : > { %2127 = vmatpush3.bf16.msra.mxu0 %v2504_v41 }
  0x2b   : > { %2128 = vmatprep.subr.bf16.mxu0 %v2507_v43 }
  0x2c   : > { %821 = vmatpush1.bf16.msra.mxu1 %v2464_v22 }
  0x2d   : > { %822 = vmatprep.subr.bf16.mxu1 %v2471_v24 }
  0x2e   : > { %2129 = vmatpush3.bf16.msra.mxu0 %v2508_v48 }
  0x2f   : > { %668 = vmatmul.mubr.bf16.gmra.mrb[4].mxu0 %v2673_v23  ;;  %788 = vmatmul.mubr.bf16.gmra.mrb[4].mxu1 %v2679_v25 }
  0x30   : > { %823 = vmatpush1.bf16.msra.mxu1 %v2469_v26  ;;  %677 = vmatprep.mubr.bf16.mxu0 %v2543_v2 }
  0x31   : > { %824 = vmatprep.subr.bf16.mxu1 %v2474_v27  ;;  %797 = vmatprep.mubr.bf16.mxu1 %v2543_v2 }
  0x32   : > { %2130 = vmatprep.subr.bf16.mxu0 %v2511_v49 }
  0x33   : > { %2131 = vmatpush3.bf16.msra.mxu0 %v2512_v51 }
  0x34   : > { %825 = vmatpush1.bf16.msra.mxu1 %v2472_v28  ;;  %2132 = vmatprep.subr.bf16.mxu0 %v2515_v53 }
  0x35   : > { %826 = vmatprep.subr.bf16.mxu1 %v2479_v29 }
  0x37   : > { %678 = vmatmul.mubr.bf16.gmra.mrb[8].mxu0 %v2698_v30  ;;  %798 = vmatmul.mubr.bf16.gmra.mrb[8].mxu1 %v2701_v31 }
  0x38   : > { %827 = vmatpush1.bf16.msra.mxu1 %v2477_v32  ;;  %687 = vmatprep.mubr.bf16.mxu0 %v2543_v2 }
  0x39   : > { %828 = vmatprep.subr.bf16.mxu1 %v2482_v33  ;;  %807 = vmatprep.mubr.bf16.mxu1 %v2543_v2 }
  0x3a   : > { %2133 = vmatpush3.bf16.msra.mxu0 %v2516_v56 }
  0x3b   : > { %2134 = vmatprep.subr.bf16.mxu0 %v2517_v58 }
  0x3c   : > { %829 = vmatpush1.bf16.msra.mxu1 %v2480_v34 }
  0x3d   : > { %830 = vmatprep.subr.bf16.mxu1 %v2487_v35 }
  0x3e   : > { %2135 = vmatpush3.bf16.msra.mxu0 %v2518_v60 }
  0x3f   : > { %688 = vmatmul.mubr.bf16.gmra.mrb[12].mxu0 %v2720_v36  ;;  %808 = vmatmul.mubr.bf16.gmra.mrb[12].mxu1 %v2723_v37 }
  0x40   : > { %831 = vmatpush1.bf16.msra.mxu1 %v2485_v38  ;;  %697 = vmatprep.mubr.bf16.mxu0 %v2543_v2 }
  0x41   : > { %832 = vmatprep.subr.bf16.mxu1 %v2490_v39  ;;  %850 = vmatprep.mubr.bf16.mxu1 %v2543_v2 }
  0x42   : > { %2136 = vmatprep.subr.bf16.mxu0 %v2521_v62 }
  0x43   : > { %2137 = vmatpush3.bf16.msra.mxu0 %v2522_v1 }
  0x44   : > { %833 = vmatpush1.bf16.msra.mxu1 %v2488_v42  ;;  %2138 = vmatprep.subr.bf16.mxu0 %v2523_v9 }
  0x45   : > { %2238 = vmatprep.subr.bf16.mxu1 %v2499_v44 }
  0x47   : > { %698 = vmatmul.mubr.bf16.gmra.mrb[16].mxu0 %v2751_v45  ;;  %851 = vmatmul.mubr.bf16.vlgmr.msra.gmra.mrb[16].mxu1 %v2654_v18  ;;  %v349_v18 = vlaneseq }
  0x48   : > { %707 = vmatprep.mubr.bf16.mxu0 %v2543_v2  ;;  %860 = vmatprep.mubr.bf16.mxu1 %v2543_v2 }
  0x49   : > { %2239 = vmatpush3.bf16.msra.mxu1 %v2500_v46  ;;  %2139 = vmatpush3.bf16.msra.mxu0 %v2524_v10  ;;  %v2876_v20 = vshrl.u32 %v349_v18, 7 }
  0x4a   : > { %2240 = vmatprep.subr.bf16.mxu1 %v2501_v47  ;;  %2140 = vmatprep.subr.bf16.mxu0 %v2525_v12 }
  0x4b   : > { %v351_v21 = vsub.s32 0, %v2876_v20  ;;  %v355_v22 = vsub.s32 1, %v2876_v20 }
  0x4d   : > { %2241 = vmatpush3.bf16.msra.mxu1 %v2502_v50  ;;  %2141 = vmatpush3.bf16.msra.mxu0 %v2526_v13 }
  0x4e   : > { %2242 = vmatprep.subr.bf16.mxu1 %v2505_v52 }
  0x4f   : > { %708 = vmatmul.mubr.bf16.gmra.mrb[20].mxu0 %v2492_v54  ;;  %861 = vmatmul.mubr.bf16.gmra.mrb[20].mxu1 %v2673_v23 }
  0x50   : > { %717 = vmatprep.mubr.bf16.mxu0 %v2543_v2  ;;  %870 = vmatprep.mubr.bf16.mxu1 %v2543_v2 }
  0x51   : > { %2243 = vmatpush3.bf16.msra.mxu1 %v2506_v55 }
  0x52   : > { %2244 = vmatprep.subr.bf16.mxu1 %v2509_v57 }
  0x55   : > { %2245 = vmatpush3.bf16.msra.mxu1 %v2510_v59 }
  0x56   : > { %2246 = vmatprep.subr.bf16.mxu1 %v2513_v61 }
  0x57   : > { %718 = vmatmul.mubr.bf16.gmra.mrb[24].mxu0 %v2493_v63  ;;  %871 = vmatmul.mubr.bf16.gmra.mrb[24].mxu1 %v2698_v30 }
  0x58   : > { %727 = vmatprep.mubr.bf16.mxu0 %v2543_v2  ;;  %880 = vmatprep.mubr.bf16.mxu1 %v2543_v2 }
  0x59   : > { %2247 = vmatpush3.bf16.msra.mxu1 %v2514_v0 }
  0x5a   : > { %2248 = vmatprep.subr.bf16.mxu1 %v2519_v3 }
  0x5d   : > { %2249 = vmatpush3.bf16.msra.mxu1 %v2520_v4 }
  0x5e   : > { %2250 = vmatprep.subr.bf16.mxu1 %v2527_v14 }
  0x5f   : > { %728 = vmatmul.mubr.bf16.gmra.mrb[28].mxu0 %v2494_v5  ;;  %881 = vmatmul.mubr.bf16.gmra.mrb[28].mxu1 %v2720_v36 }
  0x60   : > { %737 = vmatprep.mubr.bf16.mxu0 %v2543_v2  ;;  %890 = vmatprep.mubr.bf16.mxu1 %v2543_v2 }
  0x61   : > { %2251 = vmatpush3.bf16.msra.mxu1 %v2528_v15 }
  0x62   : > { %2252 = vmatprep.subr.bf16.mxu1 %v2529_v16 }
  0x65   : > { %2253 = vmatpush3.bf16.msra.mxu1 %v2530_v17 }
  0x67   : > { %738 = vmatmul.mubr.bf16.gmra.mrb[32].mxu0 %v2495_v6  ;;  %891 = vmatmul.mubr.bf16.gmra.mrb[32].mxu1 %v2751_v45 }
  0x68   : > { %747 = vmatprep.mubr.bf16.mxu0 %v2543_v2  ;;  %900 = vmatprep.mubr.bf16.mxu1 %v2543_v2 }
  0x6f   : > { %748 = vmatmul.mubr.bf16.gmra.mrb[36].mxu0 %v2496_v7  ;;  %901 = vmatmul.mubr.bf16.gmra.mrb[36].mxu1 %v2492_v54 }
  0x70   : > { %757 = vmatprep.mubr.bf16.mxu0 %v2543_v2  ;;  %910 = vmatprep.mubr.bf16.mxu1 %v2543_v2 }
  0x77   : > { %758 = vmatmul.mubr.bf16.gmra.mrb[40].mxu0 %v2497_v8  ;;  %911 = vmatmul.mubr.bf16.gmra.mrb[40].mxu1 %v2493_v63 }
  0x78   : > { %767 = vmatprep.mubr.bf16.mxu0 %v2543_v2  ;;  %920 = vmatprep.mubr.bf16.mxu1 %v2543_v2 }
  0x7f   : > { %768 = vmatmul.mubr.bf16.gmra.mrb[44].mxu0 %v2498_v11  ;;  %921 = vmatmul.mubr.bf16.gmra.mrb[44].mxu1 %v2494_v5 }
  0x80   : > { %930 = vmatprep.mubr.bf16.mxu1 %v2543_v2 }
  0x87   : > { %931 = vmatmul.mubr.bf16.gmra.mrb[48].mxu1 %v2495_v6 }
  0x88   : > { %940 = vmatprep.mubr.bf16.mxu1 %v2543_v2 }
  0x8f   : > { %941 = vmatmul.mubr.bf16.gmra.mrb[52].mxu1 %v2496_v7 }
  0x90   : > { %950 = vmatprep.mubr.bf16.mxu1 %v2543_v2 }
  0x97   : > { %951 = vmatmul.mubr.bf16.gmra.mrb[56].mxu1 %v2497_v8 }
  0x98   : > { %960 = vmatprep.mubr.bf16.mxu1 %v2543_v2 }
  0x9f   : > { %961 = vmatmul.mubr.bf16.gmra.mrb[60].mxu1 %v2498_v11 }
  0xa0   : > { %970 = vmatprep.mubr.bf16.mxu1 %v2543_v2 }
  0xa7   : > { %971 = vmatmul.mubr.bf16.gmra.mrb[64].mxu1 %v2657_v19  ;;  %v2882_v19 = vld [vmem:[%s3307_s2] sm:$0xf] }
  0xa8   : > { %980 = vmatprep.mubr.bf16.mxu1 %v2543_v2  ;;  %v2886_v23 = vrot.slane %v2882_v19, %v351_v21 }
  0xaf   : > { %981 = vmatmul.mubr.bf16.gmra.mrb[68].mxu1 %v2679_v25 }
  0xb0   : > { %990 = vmatprep.mubr.bf16.mxu1 %v2543_v2 }
  0xb7   : > { %991 = vmatmul.mubr.bf16.gmra.mrb[72].mxu1 %v2701_v31 }
  0xb8   : > { %1000 = vmatprep.mubr.bf16.mxu1 %v2543_v2  ;;  %v2889_v2 = vrot.slane %v2882_v19, %v355_v22 }
  0xbf   : > { %1001 = vmatmul.mubr.bf16.gmra.mrb[76].mxu1 %v2723_v37 }
  0xfa   : > { %v659_v24 = vpop.f32.mrb[0].mxu0  ;;  %v779_v25 = vpop.f32.mrb[0].mxu1 }
  0xfb   : > { %v660_v26 = vadd.f32 %v659_v24, %v2886_v23  ;;  %v661_v27 = vpop.f32.mrb[1].mxu0  ;;  %v781_v28 = vpop.f32.mrb[1].mxu1  ;;  %v2894_v32 = vadd.f32 %v779_v25, %v2886_v23 }
  0xfc   : > { %v662_v29 = vadd.f32 %v661_v27, %v2889_v2  ;;  %v663_v30 = vpop.f32.mrb[2].mxu0  ;;  %v783_v31 = vpop.f32.mrb[2].mxu1  ;;  %v2901_v37 = vadd.f32 %v781_v28, %v2889_v2 }
  0xfd   : > { %v664_v33 = vadd.f32 %v663_v30, %v2886_v23  ;;  %v2898_v34 = vadd.f32 %v783_v31, %v2886_v23  ;;  %v665_v35 = vpop.f32.mrb[3].mxu0  ;;  %v785_v36 = vpop.f32.mrb[3].mxu1 }
  0xfe   : > { %v666_v38 = vadd.f32 %v665_v35, %v2889_v2  ;;  %v2905_v39 = vadd.f32 %v785_v36, %v2889_v2 }
  0xff   : > { %v1011_v40 = vpack.c.bf16 %v664_v33, %v660_v26  ;;  %v1059_v41 = vpack.c.bf16 %v2898_v34, %v2894_v32 }
 0x100   : > { %v1012_v42 = vpack.c.bf16 %v666_v38, %v662_v29  ;;  %v1060_v43 = vpack.c.bf16 %v2905_v39, %v2901_v37 }
 0x102   : > { %v669_v44 = vpop.f32.mrb[4].mxu0  ;;  %v789_v45 = vpop.f32.mrb[4].mxu1  ;;  %1370 = vmatprep.mubr.bf16.mxu0 %v1012_v42  ;;  %v359_v42 = vsub.s32 2, %v2876_v20 }
 0x103   : > { %v670_v46 = vadd.f32 %v669_v44, %v2886_v23  ;;  %v671_v47 = vpop.f32.mrb[5].mxu0  ;;  %v791_v48 = vpop.f32.mrb[5].mxu1  ;;  %1371 = vmatmul.mubr.bf16.vlgmr.msra.gmra.mrb[48].mxu0 %v1011_v40  ;;  %v2914_v52 = vadd.f32 %v789_v45, %v2886_v23 }
 0x104   : > { %v672_v49 = vadd.f32 %v671_v47, %v2889_v2  ;;  %v673_v50 = vpop.f32.mrb[6].mxu0  ;;  %v793_v51 = vpop.f32.mrb[6].mxu1  ;;  %v2921_v57 = vadd.f32 %v791_v48, %v2889_v2  ;;  %v363_v47 = vsub.s32 3, %v2876_v20 }
 0x105   : > { %v674_v53 = vadd.f32 %v673_v50, %v2886_v23  ;;  %v2918_v54 = vadd.f32 %v793_v51, %v2886_v23  ;;  %v675_v55 = vpop.f32.mrb[7].mxu0  ;;  %v795_v56 = vpop.f32.mrb[7].mxu1 }
 0x106   : > { %v676_v58 = vadd.f32 %v675_v55, %v2889_v2  ;;  %v2925_v59 = vadd.f32 %v795_v56, %v2889_v2 }
 0x107   : > { %v1015_v60 = vpack.c.bf16 %v674_v53, %v670_v46  ;;  %v1063_v61 = vpack.c.bf16 %v2918_v54, %v2914_v52  ;;  %v2974_v53 = vrot.slane %v2882_v19, %v359_v42 }
 0x108   : > { %v1016_v62 = vpack.c.bf16 %v676_v58, %v672_v49  ;;  %v1064_v63 = vpack.c.bf16 %v2925_v59, %v2921_v57  ;;  %v2977_v58 = vrot.slane %v2882_v19, %v363_v47 }
 0x10a   : > { %v679_v0 = vpop.f32.mrb[8].mxu0  ;;  %v799_v1 = vpop.f32.mrb[8].mxu1  ;;  %1378 = vmatprep.mubr.bf16.mxu0 %v1016_v62 }
 0x10b   : > { %v680_v3 = vadd.f32 %v679_v0, %v2886_v23  ;;  %v681_v4 = vpop.f32.mrb[9].mxu0  ;;  %v801_v5 = vpop.f32.mrb[9].mxu1  ;;  %1379 = vmatmul.mubr.bf16.gmra.mrb[52].mxu0 %v1015_v60  ;;  %v2934_v9 = vadd.f32 %v799_v1, %v2886_v23  ;;  %v2531_v0 = vld [vmem:[%s3310_s5] sm:$0xff]   ;;  %v2532_v1 = vld [vmem:[%s3310_s5 + $0x8] sm:$0xff]  }
 0x10c   : > { %v682_v6 = vadd.f32 %v681_v4, %v2889_v2  ;;  %v683_v7 = vpop.f32.mrb[10].mxu0  ;;  %v803_v8 = vpop.f32.mrb[10].mxu1  ;;  %v2941_v14 = vadd.f32 %v801_v5, %v2889_v2  ;;  %2370 = vmatprep.subr.bf16.mxu0 %v2531_v0 }
 0x10d   : > { %v684_v10 = vadd.f32 %v683_v7, %v2886_v23  ;;  %v2938_v11 = vadd.f32 %v803_v8, %v2886_v23  ;;  %v685_v12 = vpop.f32.mrb[11].mxu0  ;;  %v805_v13 = vpop.f32.mrb[11].mxu1  ;;  %2371 = vmatpush3.bf16.msra.mxu0 %v2531_v0 }
 0x10e   : > { %v686_v15 = vadd.f32 %v685_v12, %v2889_v2  ;;  %v2945_v16 = vadd.f32 %v805_v13, %v2889_v2  ;;  %2372 = vmatprep.subr.bf16.mxu0 %v2532_v1 }
 0x10f   : > { %v1019_v17 = vpack.c.bf16 %v684_v10, %v680_v3  ;;  %v1067_v18 = vpack.c.bf16 %v2938_v11, %v2934_v9 }
 0x110   : > { %v1020_v21 = vpack.c.bf16 %v686_v15, %v682_v6  ;;  %v1068_v22 = vpack.c.bf16 %v2945_v16, %v2941_v14 }
 0x111   : > { %2373 = vmatpush3.bf16.msra.mxu0 %v2532_v1 }
 0x112   : > { %v689_v24 = vpop.f32.mrb[12].mxu0  ;;  %v809_v25 = vpop.f32.mrb[12].mxu1  ;;  %1386 = vmatprep.mubr.bf16.mxu0 %v1020_v21 }
 0x113   : > { %v690_v26 = vadd.f32 %v689_v24, %v2886_v23  ;;  %v691_v27 = vpop.f32.mrb[13].mxu0  ;;  %v811_v28 = vpop.f32.mrb[13].mxu1  ;;  %1387 = vmatmul.mubr.bf16.gmra.mrb[56].mxu0 %v1019_v17  ;;  %v2954_v33 = vadd.f32 %v809_v25, %v2886_v23 }
 0x114   : > { %v692_v29 = vadd.f32 %v691_v27, %v2889_v2  ;;  %v693_v30 = vpop.f32.mrb[14].mxu0  ;;  %v813_v31 = vpop.f32.mrb[14].mxu1  ;;  %v2962_v44 = vadd.f32 %v811_v28, %v2889_v2 }
 0x115   : > { %v694_v35 = vadd.f32 %v693_v30, %v2886_v23  ;;  %v2958_v36 = vadd.f32 %v813_v31, %v2886_v23  ;;  %v695_v38 = vpop.f32.mrb[15].mxu0  ;;  %v815_v40 = vpop.f32.mrb[15].mxu1 }
 0x116   : > { %v696_v45 = vadd.f32 %v695_v38, %v2889_v2  ;;  %v2966_v46 = vadd.f32 %v815_v40, %v2889_v2 }
 0x117   : > { %v1023_v48 = vpack.c.bf16 %v694_v35, %v690_v26  ;;  %v1071_v49 = vpack.c.bf16 %v2958_v36, %v2954_v33  ;;  %v2534_v36 = vld [vmem:[%s3310_s5 + $0x18] sm:$0xff]  }
 0x118   : > { %v1024_v50 = vpack.c.bf16 %v696_v45, %v692_v29  ;;  %v1072_v51 = vpack.c.bf16 %v2966_v46, %v2962_v44 }
 0x11a   : > { %v699_v55 = vpop.f32.mrb[16].mxu0  ;;  %v852_v56 = vpop.f32.mrb[16].mxu1  ;;  %1394 = vmatprep.mubr.bf16.mxu0 %v1024_v50 }
 0x11b   : > { %v700_v60 = vadd.f32 %v699_v55, %v2886_v23  ;;  %v701_v20 = vpop.f32.mrb[17].mxu0  ;;  %v854_v62 = vpop.f32.mrb[17].mxu1  ;;  %1395 = vmatmul.mubr.bf16.gmra.mrb[60].mxu0 %v1023_v48  ;;  %v853_v19 = vadd.f32 %v852_v56, %v2974_v53 }
 0x11c   : > { %v702_v3 = vadd.f32 %v701_v20, %v2889_v2  ;;  %v703_v4 = vpop.f32.mrb[18].mxu0  ;;  %v856_v5 = vpop.f32.mrb[18].mxu1  ;;  %v855_v12 = vadd.f32 %v854_v62, %v2977_v58 }
 0x11d   : > { %v704_v6 = vadd.f32 %v703_v4, %v2886_v23  ;;  %v857_v7 = vadd.f32 %v856_v5, %v2974_v53  ;;  %v705_v8 = vpop.f32.mrb[19].mxu0  ;;  %v858_v10 = vpop.f32.mrb[19].mxu1 }
 0x11e   : > { %v706_v13 = vadd.f32 %v705_v8, %v2889_v2  ;;  %v859_v15 = vadd.f32 %v858_v10, %v2977_v58 }
 0x11f   : > { %v1027_v17 = vpack.c.bf16 %v704_v6, %v700_v60  ;;  %v1013_v21 = vpack.c.bf16 %v857_v7, %v853_v19 }
 0x120   : > { %v1028_v24 = vpack.c.bf16 %v706_v13, %v702_v3  ;;  %v1014_v25 = vpack.c.bf16 %v859_v15, %v855_v12 }
 0x122   : > { %v709_v26 = vpop.f32.mrb[20].mxu0  ;;  %v862_v27 = vpop.f32.mrb[20].mxu1  ;;  %1402 = vmatprep.mubr.bf16.mxu0 %v1028_v24  ;;  %1531 = vmatprep.mubr.bf16.mxu1 %v1014_v25 }
 0x123   : > { %v710_v28 = vadd.f32 %v709_v26, %v2886_v23  ;;  %v711_v29 = vpop.f32.mrb[21].mxu0  ;;  %v864_v30 = vpop.f32.mrb[21].mxu1  ;;  %1403 = vmatmul.mubr.bf16.gmra.mrb[64].mxu0 %v1027_v17  ;;  %1532 = vmatmul.mubr.bf16.vlgmr.msra.gmra.mrb[80].mxu1 %v1013_v21  ;;  %v863_v40 = vadd.f32 %v862_v27, %v2974_v53 }
 0x124   : > { %v712_v31 = vadd.f32 %v711_v29, %v2889_v2  ;;  %v713_v35 = vpop.f32.mrb[22].mxu0  ;;  %v866_v38 = vpop.f32.mrb[22].mxu1  ;;  %v865_v50 = vadd.f32 %v864_v30, %v2977_v58 }
 0x125   : > { %v714_v42 = vadd.f32 %v713_v35, %v2886_v23  ;;  %v867_v45 = vadd.f32 %v866_v38, %v2974_v53  ;;  %v715_v47 = vpop.f32.mrb[23].mxu0  ;;  %v868_v48 = vpop.f32.mrb[23].mxu1 }
 0x126   : > { %v716_v55 = vadd.f32 %v715_v47, %v2889_v2  ;;  %v869_v56 = vadd.f32 %v868_v48, %v2977_v58 }
 0x127   : > { %v1031_v60 = vpack.c.bf16 %v714_v42, %v710_v28  ;;  %v1017_v20 = vpack.c.bf16 %v867_v45, %v863_v40 }
 0x128   : > { %v1032_v62 = vpack.c.bf16 %v716_v55, %v712_v31  ;;  %v1018_v0 = vpack.c.bf16 %v869_v56, %v865_v50 }
 0x12a   : > { %v719_v3 = vpop.f32.mrb[24].mxu0  ;;  %v872_v1 = vpop.f32.mrb[24].mxu1  ;;  %1410 = vmatprep.mubr.bf16.mxu0 %v1032_v62  ;;  %1539 = vmatprep.mubr.bf16.mxu1 %v1018_v0 }
 0x12b   : > { %v720_v4 = vadd.f32 %v719_v3, %v2886_v23  ;;  %v721_v5 = vpop.f32.mrb[25].mxu0  ;;  %v874_v19 = vpop.f32.mrb[25].mxu1  ;;  %1411 = vmatmul.mubr.bf16.gmra.mrb[68].mxu0 %v1031_v60  ;;  %1540 = vmatmul.mubr.bf16.gmra.mrb[84].mxu1 %v1017_v20  ;;  %v873_v10 = vadd.f32 %v872_v1, %v2974_v53 }
 0x12c   : > { %v722_v6 = vadd.f32 %v721_v5, %v2889_v2  ;;  %v723_v7 = vpop.f32.mrb[26].mxu0  ;;  %v876_v8 = vpop.f32.mrb[26].mxu1  ;;  %v875_v21 = vadd.f32 %v874_v19, %v2977_v58 }
 0x12d   : > { %v724_v12 = vadd.f32 %v723_v7, %v2886_v23  ;;  %v877_v13 = vadd.f32 %v876_v8, %v2974_v53  ;;  %v725_v15 = vpop.f32.mrb[27].mxu0  ;;  %v878_v17 = vpop.f32.mrb[27].mxu1 }
 0x12e   : > { %v726_v24 = vadd.f32 %v725_v15, %v2889_v2  ;;  %v879_v25 = vadd.f32 %v878_v17, %v2977_v58 }
 0x12f   : > { %v1035_v26 = vpack.c.bf16 %v724_v12, %v720_v4  ;;  %v1021_v27 = vpack.c.bf16 %v877_v13, %v873_v10 }
 0x130   : > { %v1036_v28 = vpack.c.bf16 %v726_v24, %v722_v6  ;;  %v1022_v29 = vpack.c.bf16 %v879_v25, %v875_v21 }
 0x132   : > { %v729_v30 = vpop.f32.mrb[28].mxu0  ;;  %v882_v31 = vpop.f32.mrb[28].mxu1  ;;  %1418 = vmatprep.mubr.bf16.mxu0 %v1036_v28  ;;  %1547 = vmatprep.mubr.bf16.mxu1 %v1022_v29 }
 0x133   : > { %v730_v35 = vadd.f32 %v729_v30, %v2886_v23  ;;  %v731_v38 = vpop.f32.mrb[29].mxu0  ;;  %v884_v40 = vpop.f32.mrb[29].mxu1  ;;  %1419 = vmatmul.mubr.bf16.gmra.mrb[72].mxu0 %v1035_v26  ;;  %1548 = vmatmul.mubr.bf16.gmra.mrb[88].mxu1 %v1021_v27  ;;  %v883_v48 = vadd.f32 %v882_v31, %v2974_v53 }
 0x134   : > { %v732_v42 = vadd.f32 %v731_v38, %v2889_v2  ;;  %v733_v45 = vpop.f32.mrb[30].mxu0  ;;  %v886_v47 = vpop.f32.mrb[30].mxu1  ;;  %v885_v20 = vadd.f32 %v884_v40, %v2977_v58 }
 0x135   : > { %v734_v50 = vadd.f32 %v733_v45, %v2886_v23  ;;  %v887_v55 = vadd.f32 %v886_v47, %v2974_v53  ;;  %v735_v56 = vpop.f32.mrb[31].mxu0  ;;  %v888_v60 = vpop.f32.mrb[31].mxu1 }
 0x136   : > { %v736_v62 = vadd.f32 %v735_v56, %v2889_v2  ;;  %v889_v0 = vadd.f32 %v888_v60, %v2977_v58 }
 0x137   : > { %v1039_v3 = vpack.c.bf16 %v734_v50, %v730_v35  ;;  %v1025_v1 = vpack.c.bf16 %v887_v55, %v883_v48 }
 0x138   : > { %v1040_v4 = vpack.c.bf16 %v736_v62, %v732_v42  ;;  %v1026_v5 = vpack.c.bf16 %v889_v0, %v885_v20 }
 0x13a   : > { %v739_v19 = vpop.f32.mrb[32].mxu0  ;;  %v892_v6 = vpop.f32.mrb[32].mxu1  ;;  %1426 = vmatprep.mubr.bf16.mxu0 %v1040_v4  ;;  %1555 = vmatprep.mubr.bf16.mxu1 %v1026_v5 }
 0x13b   : > { %v740_v7 = vadd.f32 %v739_v19, %v2886_v23  ;;  %v741_v8 = vpop.f32.mrb[33].mxu0  ;;  %v894_v10 = vpop.f32.mrb[33].mxu1  ;;  %1427 = vmatmul.mubr.bf16.gmra.mrb[76].mxu0 %v1039_v3  ;;  %1556 = vmatmul.mubr.bf16.gmra.mrb[92].mxu1 %v1025_v1  ;;  %v893_v17 = vadd.f32 %v892_v6, %v2974_v53 }
 0x13c   : > { %v742_v12 = vadd.f32 %v741_v8, %v2889_v2  ;;  %v743_v13 = vpop.f32.mrb[34].mxu0  ;;  %v896_v15 = vpop.f32.mrb[34].mxu1  ;;  %v895_v27 = vadd.f32 %v894_v10, %v2977_v58 }
 0x13d   : > { %v744_v21 = vadd.f32 %v743_v13, %v2886_v23  ;;  %v897_v24 = vadd.f32 %v896_v15, %v2974_v53  ;;  %v745_v25 = vpop.f32.mrb[35].mxu0  ;;  %v898_v26 = vpop.f32.mrb[35].mxu1 }
 0x13e   : > { %v746_v28 = vadd.f32 %v745_v25, %v2889_v2  ;;  %v899_v29 = vadd.f32 %v898_v26, %v2977_v58 }
 0x13f   : > { %v1043_v30 = vpack.c.bf16 %v744_v21, %v740_v7  ;;  %v1029_v31 = vpack.c.bf16 %v897_v24, %v893_v17 }
 0x140   : > { %v1044_v35 = vpack.c.bf16 %v746_v28, %v742_v12  ;;  %v1030_v38 = vpack.c.bf16 %v899_v29, %v895_v27 }
 0x142   : > { %v749_v40 = vpop.f32.mrb[36].mxu0  ;;  %v902_v42 = vpop.f32.mrb[36].mxu1  ;;  %1434 = vmatprep.mubr.bf16.mxu0 %v1044_v35  ;;  %1563 = vmatprep.mubr.bf16.mxu1 %v1030_v38 }
 0x143   : > { %v750_v45 = vadd.f32 %v749_v40, %v2886_v23  ;;  %v751_v47 = vpop.f32.mrb[37].mxu0  ;;  %v904_v48 = vpop.f32.mrb[37].mxu1  ;;  %1435 = vmatmul.mubr.bf16.gmra.mrb[80].mxu0 %v1043_v30  ;;  %1564 = vmatmul.mubr.bf16.gmra.mrb[96].mxu1 %v1029_v31  ;;  %v903_v60 = vadd.f32 %v902_v42, %v2974_v53 }
 0x144   : > { %v752_v50 = vadd.f32 %v751_v47, %v2889_v2  ;;  %v753_v55 = vpop.f32.mrb[38].mxu0  ;;  %v906_v56 = vpop.f32.mrb[38].mxu1  ;;  %v905_v1 = vadd.f32 %v904_v48, %v2977_v58 }
 0x145   : > { %v754_v20 = vadd.f32 %v753_v55, %v2886_v23  ;;  %v907_v62 = vadd.f32 %v906_v56, %v2974_v53  ;;  %v755_v0 = vpop.f32.mrb[39].mxu0  ;;  %v908_v3 = vpop.f32.mrb[39].mxu1 }
 0x146   : > { %v756_v4 = vadd.f32 %v755_v0, %v2889_v2  ;;  %v909_v5 = vadd.f32 %v908_v3, %v2977_v58 }
 0x147   : > { %v1047_v19 = vpack.c.bf16 %v754_v20, %v750_v45  ;;  %v1033_v6 = vpack.c.bf16 %v907_v62, %v903_v60 }
 0x148   : > { %v1048_v7 = vpack.c.bf16 %v756_v4, %v752_v50  ;;  %v1034_v8 = vpack.c.bf16 %v909_v5, %v905_v1 }
 0x14a   : > { %v759_v10 = vpop.f32.mrb[40].mxu0  ;;  %v912_v12 = vpop.f32.mrb[40].mxu1  ;;  %1442 = vmatprep.mubr.bf16.mxu0 %v1048_v7  ;;  %1571 = vmatprep.mubr.bf16.mxu1 %v1034_v8 }
 0x14b   : > { %v760_v13 = vadd.f32 %v759_v10, %v2886_v23  ;;  %v761_v15 = vpop.f32.mrb[41].mxu0  ;;  %v914_v17 = vpop.f32.mrb[41].mxu1  ;;  %1443 = vmatmul.mubr.bf16.gmra.mrb[84].mxu0 %v1047_v19  ;;  %1572 = vmatmul.mubr.bf16.gmra.mrb[100].mxu1 %v1033_v6  ;;  %v913_v26 = vadd.f32 %v912_v12, %v2974_v53 }
 0x14c   : > { %v762_v21 = vadd.f32 %v761_v15, %v2889_v2  ;;  %v763_v24 = vpop.f32.mrb[42].mxu0  ;;  %v916_v25 = vpop.f32.mrb[42].mxu1  ;;  %v915_v31 = vadd.f32 %v914_v17, %v2977_v58 }
 0x14d   : > { %v764_v27 = vadd.f32 %v763_v24, %v2886_v23  ;;  %v917_v28 = vadd.f32 %v916_v25, %v2974_v53  ;;  %v765_v29 = vpop.f32.mrb[43].mxu0  ;;  %v918_v30 = vpop.f32.mrb[43].mxu1 }
 0x14e   : > { %v766_v35 = vadd.f32 %v765_v29, %v2889_v2  ;;  %v919_v38 = vadd.f32 %v918_v30, %v2977_v58 }
 0x14f   : > { %v1051_v40 = vpack.c.bf16 %v764_v27, %v760_v13  ;;  %v1037_v42 = vpack.c.bf16 %v917_v28, %v913_v26 }
 0x150   : > { %v1052_v45 = vpack.c.bf16 %v766_v35, %v762_v21  ;;  %v1038_v47 = vpack.c.bf16 %v919_v38, %v915_v31 }
 0x152   : > { %v769_v48 = vpop.f32.mrb[44].mxu0  ;;  %v922_v50 = vpop.f32.mrb[44].mxu1  ;;  %1450 = vmatprep.mubr.bf16.mxu0 %v1052_v45  ;;  %1579 = vmatprep.mubr.bf16.mxu1 %v1038_v47 }
 0x153   : > { %v770_v55 = vadd.f32 %v769_v48, %v2886_v23  ;;  %v771_v56 = vpop.f32.mrb[45].mxu0  ;;  %v924_v60 = vpop.f32.mrb[45].mxu1  ;;  %1451 = vmatmul.mubr.bf16.gmra.mrb[88].mxu0 %v1051_v40  ;;  %1580 = vmatmul.mubr.bf16.gmra.mrb[104].mxu1 %v1037_v42  ;;  %v923_v3 = vadd.f32 %v922_v50, %v2974_v53 }
 0x154   : > { %v772_v20 = vadd.f32 %v771_v56, %v2889_v2  ;;  %v773_v62 = vpop.f32.mrb[46].mxu0  ;;  %v926_v0 = vpop.f32.mrb[46].mxu1  ;;  %v925_v6 = vadd.f32 %v924_v60, %v2977_v58 }
 0x155   : > { %v774_v1 = vadd.f32 %v773_v62, %v2886_v23  ;;  %v927_v4 = vadd.f32 %v926_v0, %v2974_v53  ;;  %v775_v5 = vpop.f32.mrb[47].mxu0  ;;  %v928_v19 = vpop.f32.mrb[47].mxu1 }
 0x156   : > { %v776_v7 = vadd.f32 %v775_v5, %v2889_v2  ;;  %v929_v8 = vadd.f32 %v928_v19, %v2977_v58 }
 0x157   : > { %v1055_v10 = vpack.c.bf16 %v774_v1, %v770_v55  ;;  %v1041_v12 = vpack.c.bf16 %v927_v4, %v923_v3  ;;  %v2533_v1 = vld [vmem:[%s3310_s5 + $0x10] sm:$0xff]  }
 0x158   : > { %v1056_v13 = vpack.c.bf16 %v776_v7, %v772_v20  ;;  %v1042_v15 = vpack.c.bf16 %v929_v8, %v925_v6  ;;  %2374 = vmatprep.subr.bf16.mxu0 %v2533_v1 }
 0x159   : > { %2375 = vmatpush3.bf16.msra.mxu0 %v2533_v1 }
 0x15a   : > { %v932_v17 = vpop.f32.mrb[48].mxu1  ;;  %1458 = vmatprep.mubr.bf16.mxu0 %v1056_v13  ;;  %1587 = vmatprep.mubr.bf16.mxu1 %v1042_v15 }
 0x15b   : > { %v934_v21 = vpop.f32.mrb[49].mxu1  ;;  %1459 = vmatmul.mubr.bf16.gmra.mrb[92].mxu0 %v1055_v10  ;;  %1588 = vmatmul.mubr.bf16.gmra.mrb[108].mxu1 %v1041_v12  ;;  %v933_v24 = vadd.f32 %v932_v17, %v2974_v53 }
 0x15c   : > { %v936_v23 = vpop.f32.mrb[50].mxu1  ;;  %1466 = vmatprep.mubr.bf16.mxu0 %v1060_v43  ;;  %v935_v26 = vadd.f32 %v934_v21, %v2977_v58  ;;  %2376 = vmatprep.subr.bf16.mxu0 %v2534_v36 }
 0x15d   : > { %v937_v2 = vadd.f32 %v936_v23, %v2974_v53  ;;  %v938_v25 = vpop.f32.mrb[51].mxu1  ;;  %2377 = vmatpush3.bf16.msra.mxu0 %v2534_v36 }
 0x15e   : > { %v939_v27 = vadd.f32 %v938_v25, %v2977_v58 }
 0x15f   : > { %v1045_v28 = vpack.c.bf16 %v937_v2, %v933_v24 }
 0x160   : > { %v1046_v29 = vpack.c.bf16 %v939_v27, %v935_v26 }
 0x162   : > { %v942_v30 = vpop.f32.mrb[52].mxu1  ;;  %1595 = vmatprep.mubr.bf16.mxu1 %v1046_v29 }
 0x163   : > { %v944_v31 = vpop.f32.mrb[53].mxu1  ;;  %1467 = vmatmul.mubr.bf16.gmra.mrb[96].mxu0 %v1059_v41  ;;  %1596 = vmatmul.mubr.bf16.gmra.mrb[112].mxu1 %v1045_v28  ;;  %v943_v39 = vadd.f32 %v942_v30, %v2974_v53 }
 0x164   : > { %v946_v37 = vpop.f32.mrb[54].mxu1  ;;  %1474 = vmatprep.mubr.bf16.mxu0 %v1064_v63  ;;  %v945_v38 = vadd.f32 %v944_v31, %v2977_v58 }
 0x165   : > { %v947_v43 = vadd.f32 %v946_v37, %v2974_v53  ;;  %v948_v35 = vpop.f32.mrb[55].mxu1 }
 0x166   : > { %v949_v40 = vadd.f32 %v948_v35, %v2977_v58 }
 0x167   : > { %v1049_v42 = vpack.c.bf16 %v947_v43, %v943_v39 }
 0x168   : > { %v1050_v45 = vpack.c.bf16 %v949_v40, %v945_v38 }
 0x16a   : > { %v952_v47 = vpop.f32.mrb[56].mxu1  ;;  %1603 = vmatprep.mubr.bf16.mxu1 %v1050_v45 }
 0x16b   : > { %v954_v32 = vpop.f32.mrb[57].mxu1  ;;  %1475 = vmatmul.mubr.bf16.gmra.mrb[100].mxu0 %v1063_v61  ;;  %1604 = vmatmul.mubr.bf16.gmra.mrb[116].mxu1 %v1049_v42  ;;  %v953_v41 = vadd.f32 %v952_v47, %v2974_v53 }
 0x16c   : > { %v956_v34 = vpop.f32.mrb[58].mxu1  ;;  %1482 = vmatprep.mubr.bf16.mxu0 %v1068_v22  ;;  %v955_v63 = vadd.f32 %v954_v32, %v2977_v58 }
 0x16d   : > { %v957_v57 = vadd.f32 %v956_v34, %v2974_v53  ;;  %v958_v59 = vpop.f32.mrb[59].mxu1 }
 0x16e   : > { %v959_v48 = vadd.f32 %v958_v59, %v2977_v58 }
 0x16f   : > { %v1053_v50 = vpack.c.bf16 %v957_v57, %v953_v41 }
 0x170   : > { %v1054_v55 = vpack.c.bf16 %v959_v48, %v955_v63 }
 0x172   : > { %v962_v56 = vpop.f32.mrb[60].mxu1  ;;  %1611 = vmatprep.mubr.bf16.mxu1 %v1054_v55 }
 0x173   : > { %v964_v52 = vpop.f32.mrb[61].mxu1  ;;  %1483 = vmatmul.mubr.bf16.gmra.mrb[104].mxu0 %v1067_v18  ;;  %1612 = vmatmul.mubr.bf16.gmra.mrb[120].mxu1 %v1053_v50  ;;  %v963_v61 = vadd.f32 %v962_v56, %v2974_v53 }
 0x174   : > { %v966_v54 = vpop.f32.mrb[62].mxu1  ;;  %1490 = vmatprep.mubr.bf16.mxu0 %v1072_v51  ;;  %v965_v22 = vadd.f32 %v964_v52, %v2977_v58 }
 0x175   : > { %v967_v14 = vadd.f32 %v966_v54, %v2974_v53  ;;  %v968_v16 = vpop.f32.mrb[63].mxu1 }
 0x176   : > { %v969_v60 = vadd.f32 %v968_v16, %v2977_v58 }
 0x177   : > { %v1057_v20 = vpack.c.bf16 %v967_v14, %v963_v61 }
 0x178   : > { %v1058_v62 = vpack.c.bf16 %v969_v60, %v965_v22 }
 0x17a   : > { %v972_v0 = vpop.f32.mrb[64].mxu1  ;;  %1619 = vmatprep.mubr.bf16.mxu1 %v1058_v62 }
 0x17b   : > { %v974_v9 = vpop.f32.mrb[65].mxu1  ;;  %1491 = vmatmul.mubr.bf16.gmra.mrb[108].mxu0 %v1071_v49  ;;  %1620 = vmatmul.mubr.bf16.gmra.mrb[124].mxu1 %v1057_v20  ;;  %v973_v18 = vadd.f32 %v972_v0, %v2974_v53 }
 0x17c   : > { %v976_v11 = vpop.f32.mrb[66].mxu1  ;;  %v975_v51 = vadd.f32 %v974_v9, %v2977_v58 }
 0x17d   : > { %v977_v44 = vadd.f32 %v976_v11, %v2974_v53  ;;  %v978_v46 = vpop.f32.mrb[67].mxu1  ;;  %v3118_v11 = vld [vmem:[%s3309_s4] ss:$0 sm:$0xff] }
 0x17e   : > { %v979_v3 = vadd.f32 %v978_v46, %v2977_v58 }
 0x17f   : > { %v1061_v4 = vpack.c.bf16 %v977_v44, %v973_v18 }
 0x180   : > { %v1062_v5 = vpack.c.bf16 %v979_v3, %v975_v51 }
 0x182   : > { %v982_v33 = vpop.f32.mrb[68].mxu1  ;;  %1627 = vmatprep.mubr.bf16.mxu1 %v1062_v5 }
 0x183   : > { %v984_v49 = vpop.f32.mrb[69].mxu1  ;;  %1628 = vmatmul.mubr.bf16.gmra.mrb[128].mxu1 %v1061_v4  ;;  %v983_v6 = vadd.f32 %v982_v33, %v2974_v53 }
 0x184   : > { %v986_v19 = vpop.f32.mrb[70].mxu1  ;;  %v985_v10 = vadd.f32 %v984_v49, %v2977_v58 }
 0x185   : > { %v987_v7 = vadd.f32 %v986_v19, %v2974_v53  ;;  %v988_v8 = vpop.f32.mrb[71].mxu1 }
 0x186   : > { %v989_v12 = vadd.f32 %v988_v8, %v2977_v58 }
 0x187   : > { %v1065_v13 = vpack.c.bf16 %v987_v7, %v983_v6 }
 0x188   : > { %v1066_v15 = vpack.c.bf16 %v989_v12, %v985_v10 }
 0x18a   : > { %v992_v17 = vpop.f32.mrb[72].mxu1  ;;  %1635 = vmatprep.mubr.bf16.mxu1 %v1066_v15 }
 0x18b   : > { %v994_v21 = vpop.f32.mrb[73].mxu1  ;;  %1636 = vmatmul.mubr.bf16.gmra.mrb[132].mxu1 %v1065_v13  ;;  %v993_v24 = vadd.f32 %v992_v17, %v2974_v53 }
 0x18c   : > { %v996_v23 = vpop.f32.mrb[74].mxu1  ;;  %v995_v26 = vadd.f32 %v994_v21, %v2977_v58 }
 0x18d   : > { %v997_v2 = vadd.f32 %v996_v23, %v2974_v53  ;;  %v998_v25 = vpop.f32.mrb[75].mxu1 }
 0x18e   : > { %v999_v27 = vadd.f32 %v998_v25, %v2977_v58 }
 0x18f   : > { %v1069_v28 = vpack.c.bf16 %v997_v2, %v993_v24 }
 0x190   : > { %v1070_v29 = vpack.c.bf16 %v999_v27, %v995_v26 }
 0x192   : > { %v1002_v30 = vpop.f32.mrb[76].mxu1  ;;  %1643 = vmatprep.mubr.bf16.mxu1 %v1070_v29 }
 0x193   : > { %v1004_v31 = vpop.f32.mrb[77].mxu1  ;;  %1644 = vmatmul.mubr.bf16.gmra.mrb[136].mxu1 %v1069_v28  ;;  %v1003_v39 = vadd.f32 %v1002_v30, %v2974_v53 }
 0x194   : > { %v1006_v37 = vpop.f32.mrb[78].mxu1  ;;  %v1005_v38 = vadd.f32 %v1004_v31, %v2977_v58 }
 0x195   : > { %v1007_v43 = vadd.f32 %v1006_v37, %v2974_v53  ;;  %v1008_v35 = vpop.f32.mrb[79].mxu1 }
 0x196   : > { %v1009_v40 = vadd.f32 %v1008_v35, %v2977_v58 }
 0x197   : > { %v1073_v42 = vpack.c.bf16 %v1007_v43, %v1003_v39 }
 0x198   : > { %v1074_v45 = vpack.c.bf16 %v1009_v40, %v1005_v38 }
 0x19a   : > { %1651 = vmatprep.mubr.bf16.mxu1 %v1074_v45 }
 0x19b   : > { %1652 = vmatmul.mubr.bf16.gmra.mrb[140].mxu1 %v1073_v42 }
 0x1d6   : > { %v2142_v47 = vpop.f32.mrb[48].mxu0 }
 0x1d7   : > { %v2143_v32 = vpop.f32.mrb[49].mxu0 }
 0x1d8   : > { %v2144_v34 = vadd.f32 %v2143_v32, %v2142_v47  ;;  %v2145_v41 = vpop.f32.mrb[50].mxu0 }
 0x1d9   : > { %v2146_v57 = vpop.f32.mrb[51].mxu0 }
 0x1da   : > { %v2147_v59 = vadd.f32 %v2146_v57, %v2145_v41  ;;  %v1373_v3 = vadd.f32 %v2144_v34, %v3118_v11 }
 0x1dc   : > { %v1376_v19 = vadd.f32 %v2147_v59, %v3118_v11 }
 0x1de   : > { %v2148_v63 = vpop.f32.mrb[52].mxu0 }
 0x1df   : > { %v2149_v48 = vpop.f32.mrb[53].mxu0 }
 0x1e0   : > { %v2150_v50 = vadd.f32 %v2149_v48, %v2148_v63  ;;  %v2151_v55 = vpop.f32.mrb[54].mxu0 }
 0x1e1   : > { %v2152_v53 = vpop.f32.mrb[55].mxu0 }
 0x1e2   : > { %v2153_v56 = vadd.f32 %v2152_v53, %v2151_v55  ;;  %v1381_v23 = vadd.f32 %v2150_v50, %v3118_v11 }
 0x1e4   : > { %v1384_v29 = vadd.f32 %v2153_v56, %v3118_v11 }
 0x1e6   : > { %v2154_v52 = vpop.f32.mrb[56].mxu0 }
 0x1e7   : > { %v2155_v54 = vpop.f32.mrb[57].mxu0 }
 0x1e8   : > { %v2156_v61 = vadd.f32 %v2155_v54, %v2154_v52  ;;  %v2157_v58 = vpop.f32.mrb[58].mxu0 }
 0x1e9   : > { %v2158_v14 = vpop.f32.mrb[59].mxu0 }
 0x1ea   : > { %v2159_v16 = vadd.f32 %v2158_v14, %v2157_v58  ;;  %v1389_v45 = vadd.f32 %v2156_v61, %v3118_v11 }
 0x1ec   : > { %v1392_v63 = vadd.f32 %v2159_v16, %v3118_v11 }
 0x1ee   : > { %v2160_v22 = vpop.f32.mrb[60].mxu0 }
 0x1ef   : > { %v2161_v60 = vpop.f32.mrb[61].mxu0 }
 0x1f0   : > { %v3111_v20 = vadd.f32 %v2161_v60, %v2160_v22  ;;  %v2163_v62 = vpop.f32.mrb[62].mxu0 }
 0x1f1   : > { %v2164_v0 = vpop.f32.mrb[63].mxu0 }
 0x1f2   : > { %v3113_v9 = vadd.f32 %v2164_v0, %v2163_v62  ;;  %v1397_v14 = vadd.f32 %v3111_v20, %v3118_v11 }
 0x1f6   : > { %v2254_v18 = vpop.f32.mrb[80].mxu1  ;;  %v2166_v44 = vpop.f32.mrb[64].mxu0 }
 0x1f7   : > { %v2255_v46 = vpop.f32.mrb[81].mxu1  ;;  %v2167_v51 = vpop.f32.mrb[65].mxu0 }
 0x1f8   : > { %v2256_v1 = vadd.f32 %v2255_v46, %v2254_v18  ;;  %v2257_v4 = vpop.f32.mrb[82].mxu1  ;;  %v3121_v5 = vadd.f32 %v2167_v51, %v2166_v44  ;;  %v2169_v33 = vpop.f32.mrb[66].mxu0  ;;  %v1400_v44 = vadd.f32 %v3113_v9, %v3118_v11 }
 0x1f9   : > { %v2258_v36 = vpop.f32.mrb[83].mxu1  ;;  %v2170_v49 = vpop.f32.mrb[67].mxu0 }
 0x1fa   : > { %v1534_v6 = vadd.f32 %v2256_v1, %v1373_v3  ;;  %v2259_v7 = vadd.f32 %v2258_v36, %v2257_v4  ;;  %v3124_v8 = vadd.f32 %v2170_v49, %v2169_v33 }
 0x1fc   : > { %v1537_v10 = vadd.f32 %v2259_v7, %v1376_v19  ;;  %v1405_v19 = vadd.f32 %v3121_v5, %v3118_v11 }
 0x1fe   : > { %v1660_v12 = vpack.c.bf16 %v1537_v10, %v1534_v6  ;;  %v2260_v13 = vpop.f32.mrb[84].mxu1  ;;  %v2172_v15 = vpop.f32.mrb[68].mxu0 }
 0x1ff   : > { %v2261_v17 = vpop.f32.mrb[85].mxu1  ;;  %v2173_v21 = vpop.f32.mrb[69].mxu0 }
 0x200   : > { %v2262_v24 = vadd.f32 %v2261_v17, %v2260_v13  ;;  %v2263_v2 = vpop.f32.mrb[86].mxu1  ;;  %2378 = vmatprep.mubr.msk.bf16.mxu0 %vm1715_vm0, %v1660_v12  ;;  %v3128_v25 = vadd.f32 %v2173_v21, %v2172_v15  ;;  %v2175_v26 = vpop.f32.mrb[70].mxu0  ;;  %v1408_v15 = vadd.f32 %v3124_v8, %v3118_v11 }
 0x201   : > { %v2264_v27 = vpop.f32.mrb[87].mxu1  ;;  %v2176_v28 = vpop.f32.mrb[71].mxu0 }
 0x202   : > { %v1542_v30 = vadd.f32 %v2262_v24, %v1381_v23  ;;  %v2265_v31 = vadd.f32 %v2264_v27, %v2263_v2  ;;  %v3131_v37 = vadd.f32 %v2176_v28, %v2175_v26 }
 0x204   : > { %v1545_v39 = vadd.f32 %v2265_v31, %v1384_v29  ;;  %v1413_v29 = vadd.f32 %v3128_v25, %v3118_v11 }
 0x206   : > { %v1661_v43 = vpack.c.bf16 %v1545_v39, %v1542_v30  ;;  %v2266_v35 = vpop.f32.mrb[88].mxu1  ;;  %v2178_v38 = vpop.f32.mrb[72].mxu0 }
 0x207   : > { %v2267_v40 = vpop.f32.mrb[89].mxu1  ;;  %v2179_v42 = vpop.f32.mrb[73].mxu0 }
 0x208   : > { %v2268_v47 = vadd.f32 %v2267_v40, %v2266_v35  ;;  %v2269_v32 = vpop.f32.mrb[90].mxu1  ;;  %2379 = vmatmul.mubr.msk.bf16.vlgmr.msra.gmra.mrb[112].mxu0 %vm1715_vm0, %v1661_v43  ;;  %v3135_v34 = vadd.f32 %v2179_v42, %v2178_v38  ;;  %v2181_v41 = vpop.f32.mrb[74].mxu0  ;;  %v1416_v38 = vadd.f32 %v3131_v37, %v3118_v11 }
 0x209   : > { %v2270_v57 = vpop.f32.mrb[91].mxu1  ;;  %v2182_v59 = vpop.f32.mrb[75].mxu0 }
 0x20a   : > { %v1550_v48 = vadd.f32 %v2268_v47, %v1389_v45  ;;  %v2271_v50 = vadd.f32 %v2270_v57, %v2269_v32  ;;  %v3138_v55 = vadd.f32 %v2182_v59, %v2181_v41 }
 0x20c   : > { %v1553_v53 = vadd.f32 %v2271_v50, %v1392_v63  ;;  %v1421_v63 = vadd.f32 %v3135_v34, %v3118_v11 }
 0x20e   : > { %v1662_v56 = vpack.c.bf16 %v1553_v53, %v1550_v48  ;;  %v2272_v52 = vpop.f32.mrb[92].mxu1  ;;  %v2184_v54 = vpop.f32.mrb[76].mxu0 }
 0x20f   : > { %v2273_v61 = vpop.f32.mrb[93].mxu1  ;;  %v2185_v58 = vpop.f32.mrb[77].mxu0 }
 0x210   : > { %v2274_v22 = vadd.f32 %v2273_v61, %v2272_v52  ;;  %v2275_v60 = vpop.f32.mrb[94].mxu1  ;;  %2382 = vmatprep.mubr.msk.bf16.mxu0 %vm1715_vm0, %v1662_v56  ;;  %v3143_v62 = vadd.f32 %v2185_v58, %v2184_v54  ;;  %v2187_v16 = vpop.f32.mrb[78].mxu0  ;;  %v1424_v54 = vadd.f32 %v3138_v55, %v3118_v11 }
 0x211   : > { %v2276_v0 = vpop.f32.mrb[95].mxu1  ;;  %v2188_v18 = vpop.f32.mrb[79].mxu0 }
 0x212   : > { %v1558_v46 = vadd.f32 %v2274_v22, %v1397_v14  ;;  %v2277_v51 = vadd.f32 %v2276_v0, %v2275_v60  ;;  %v3147_v3 = vadd.f32 %v2188_v18, %v2187_v16 }
 0x214   : > { %v1561_v1 = vadd.f32 %v2277_v51, %v1400_v44  ;;  %v1429_v44 = vadd.f32 %v3143_v62, %v3118_v11 }
 0x216   : > { %v1663_v4 = vpack.c.bf16 %v1561_v1, %v1558_v46  ;;  %v2278_v33 = vpop.f32.mrb[96].mxu1  ;;  %v2190_v20 = vpop.f32.mrb[80].mxu0 }
 0x217   : > { %v2279_v36 = vpop.f32.mrb[97].mxu1  ;;  %v2191_v49 = vpop.f32.mrb[81].mxu0 }
 0x218   : > { %v2280_v6 = vadd.f32 %v2279_v36, %v2278_v33  ;;  %v2281_v7 = vpop.f32.mrb[98].mxu1  ;;  %2383 = vmatmul.mubr.msk.bf16.gmra.mrb[116].mxu0 %vm1715_vm0, %v1663_v4  ;;  %v3152_v10 = vadd.f32 %v2191_v49, %v2190_v20  ;;  %v2193_v9 = vpop.f32.mrb[82].mxu0  ;;  %v1432_v20 = vadd.f32 %v3147_v3, %v3118_v11 }
 0x219   : > { %v2282_v12 = vpop.f32.mrb[99].mxu1  ;;  %v2194_v13 = vpop.f32.mrb[83].mxu0 }
 0x21a   : > { %v1566_v17 = vadd.f32 %v2280_v6, %v1405_v19  ;;  %v2283_v21 = vadd.f32 %v2282_v12, %v2281_v7  ;;  %v3156_v23 = vadd.f32 %v2194_v13, %v2193_v9 }
 0x21c   : > { %v1569_v24 = vadd.f32 %v2283_v21, %v1408_v15  ;;  %v1437_v15 = vadd.f32 %v3152_v10, %v3118_v11 }
 0x21e   : > { %v1664_v2 = vpack.c.bf16 %v1569_v24, %v1566_v17  ;;  %v2284_v26 = vpop.f32.mrb[100].mxu1  ;;  %v2196_v5 = vpop.f32.mrb[84].mxu0 }
 0x21f   : > { %v2285_v27 = vpop.f32.mrb[101].mxu1  ;;  %v2197_v28 = vpop.f32.mrb[85].mxu0 }
 0x220   : > { %v2286_v30 = vadd.f32 %v2285_v27, %v2284_v26  ;;  %v2287_v31 = vpop.f32.mrb[102].mxu1  ;;  %2386 = vmatprep.mubr.msk.bf16.mxu0 %vm1715_vm0, %v1664_v2  ;;  %v3161_v39 = vadd.f32 %v2197_v28, %v2196_v5  ;;  %v2199_v8 = vpop.f32.mrb[86].mxu0  ;;  %v1440_v5 = vadd.f32 %v3156_v23, %v3118_v11 }
 0x221   : > { %v2288_v43 = vpop.f32.mrb[103].mxu1  ;;  %v2200_v35 = vpop.f32.mrb[87].mxu0 }
 0x222   : > { %v1574_v40 = vadd.f32 %v2286_v30, %v1413_v29  ;;  %v2289_v42 = vadd.f32 %v2288_v43, %v2287_v31  ;;  %v3165_v45 = vadd.f32 %v2200_v35, %v2199_v8 }
 0x224   : > { %v1577_v47 = vadd.f32 %v2289_v42, %v1416_v38  ;;  %v1445_v38 = vadd.f32 %v3161_v39, %v3118_v11 }
 0x226   : > { %v1665_v32 = vpack.c.bf16 %v1577_v47, %v1574_v40  ;;  %v2290_v41 = vpop.f32.mrb[104].mxu1  ;;  %v2202_v25 = vpop.f32.mrb[88].mxu0 }
 0x227   : > { %v2291_v57 = vpop.f32.mrb[105].mxu1  ;;  %v2203_v59 = vpop.f32.mrb[89].mxu0 }
 0x228   : > { %v2292_v48 = vadd.f32 %v2291_v57, %v2290_v41  ;;  %v2293_v50 = vpop.f32.mrb[106].mxu1  ;;  %2387 = vmatmul.mubr.msk.bf16.gmra.mrb[120].mxu0 %vm1715_vm0, %v1665_v32  ;;  %v3170_v53 = vadd.f32 %v2203_v59, %v2202_v25  ;;  %v2205_v37 = vpop.f32.mrb[90].mxu0  ;;  %v1448_v25 = vadd.f32 %v3165_v45, %v3118_v11 }
 0x229   : > { %v2294_v56 = vpop.f32.mrb[107].mxu1  ;;  %v2206_v52 = vpop.f32.mrb[91].mxu0 }
 0x22a   : > { %v1582_v61 = vadd.f32 %v2292_v48, %v1421_v63  ;;  %v2295_v58 = vadd.f32 %v2294_v56, %v2293_v50  ;;  %v3174_v14 = vadd.f32 %v2206_v52, %v2205_v37 }
 0x22c   : > { %v1585_v22 = vadd.f32 %v2295_v58, %v1424_v54  ;;  %v1453_v54 = vadd.f32 %v3170_v53, %v3118_v11 }
 0x22e   : > { %v1666_v60 = vpack.c.bf16 %v1585_v22, %v1582_v61  ;;  %v2296_v16 = vpop.f32.mrb[108].mxu1  ;;  %v2208_v34 = vpop.f32.mrb[92].mxu0 }
 0x22f   : > { %v2297_v0 = vpop.f32.mrb[109].mxu1  ;;  %v2209_v18 = vpop.f32.mrb[93].mxu0 }
 0x230   : > { %v2298_v46 = vadd.f32 %v2297_v0, %v2296_v16  ;;  %v2299_v51 = vpop.f32.mrb[110].mxu1  ;;  %2390 = vmatprep.mubr.msk.bf16.mxu0 %vm1715_vm0, %v1666_v60  ;;  %v3179_v1 = vadd.f32 %v2209_v18, %v2208_v34  ;;  %v2211_v55 = vpop.f32.mrb[94].mxu0  ;;  %v1456_v34 = vadd.f32 %v3174_v14, %v3118_v11 }
 0x231   : > { %v2300_v4 = vpop.f32.mrb[111].mxu1  ;;  %v2212_v33 = vpop.f32.mrb[95].mxu0 }
 0x232   : > { %v1590_v36 = vadd.f32 %v2298_v46, %v1429_v44  ;;  %v2301_v49 = vadd.f32 %v2300_v4, %v2299_v51  ;;  %v3183_v19 = vadd.f32 %v2212_v33, %v2211_v55 }
 0x234   : > { %v1593_v6 = vadd.f32 %v2301_v49, %v1432_v20  ;;  %v1461_v20 = vadd.f32 %v3179_v1, %v3118_v11 }
 0x236   : > { %v1667_v7 = vpack.c.bf16 %v1593_v6, %v1590_v36  ;;  %v2214_v9 = vpop.f32.mrb[96].mxu0  ;;  %v2302_v62 = vpop.f32.mrb[112].mxu1 }
 0x237   : > { %v2215_v12 = vpop.f32.mrb[97].mxu0  ;;  %v2303_v13 = vpop.f32.mrb[113].mxu1 }
 0x238   : > { %v3187_v17 = vadd.f32 %v2215_v12, %v2214_v9  ;;  %v2304_v21 = vadd.f32 %v2303_v13, %v2302_v62  ;;  %v2217_v24 = vpop.f32.mrb[98].mxu0  ;;  %v2305_v2 = vpop.f32.mrb[114].mxu1  ;;  %2391 = vmatmul.mubr.msk.bf16.gmra.mrb[124].mxu0 %vm1715_vm0, %v1667_v7  ;;  %v1464_v62 = vadd.f32 %v3183_v19, %v3118_v11 }
 0x239   : > { %v2218_v3 = vpop.f32.mrb[99].mxu0  ;;  %v2306_v26 = vpop.f32.mrb[115].mxu1 }
 0x23a   : > { %v1598_v27 = vadd.f32 %v2304_v21, %v1437_v15  ;;  %v3192_v28 = vadd.f32 %v2218_v3, %v2217_v24  ;;  %v2307_v29 = vadd.f32 %v2306_v26, %v2305_v2  ;;  %v1469_v1 = vadd.f32 %v3187_v17, %v3118_v11 }
 0x23c   : > { %v1601_v30 = vadd.f32 %v2307_v29, %v1440_v5  ;;  %v1472_v29 = vadd.f32 %v3192_v28, %v3118_v11 }
 0x23e   : > { %v1668_v31 = vpack.c.bf16 %v1601_v30, %v1598_v27  ;;  %v2220_v8 = vpop.f32.mrb[100].mxu0  ;;  %v2308_v10 = vpop.f32.mrb[116].mxu1 }
 0x23f   : > { %v2221_v43 = vpop.f32.mrb[101].mxu0  ;;  %v2309_v35 = vpop.f32.mrb[117].mxu1 }
 0x240   : > { %v3196_v40 = vadd.f32 %v2221_v43, %v2220_v8  ;;  %v2310_v42 = vadd.f32 %v2309_v35, %v2308_v10  ;;  %v2223_v47 = vpop.f32.mrb[102].mxu0  ;;  %v2311_v32 = vpop.f32.mrb[118].mxu1  ;;  %2394 = vmatprep.mubr.msk.bf16.mxu0 %vm1715_vm0, %v1668_v31 }
 0x241   : > { %v2224_v23 = vpop.f32.mrb[103].mxu0  ;;  %v2312_v41 = vpop.f32.mrb[119].mxu1 }
 0x242   : > { %v1606_v57 = vadd.f32 %v2310_v42, %v1445_v38  ;;  %v2225_v59 = vadd.f32 %v2224_v23, %v2223_v47  ;;  %v2313_v63 = vadd.f32 %v2312_v41, %v2311_v32  ;;  %v1477_v35 = vadd.f32 %v3196_v40, %v3118_v11 }
 0x244   : > { %v1609_v48 = vadd.f32 %v2313_v63, %v1448_v25  ;;  %v1480_v47 = vadd.f32 %v2225_v59, %v3118_v11 }
 0x246   : > { %v1669_v50 = vpack.c.bf16 %v1609_v48, %v1606_v57  ;;  %v2226_v37 = vpop.f32.mrb[104].mxu0  ;;  %v2314_v56 = vpop.f32.mrb[120].mxu1 }
 0x247   : > { %v2227_v39 = vpop.f32.mrb[105].mxu0  ;;  %v2315_v52 = vpop.f32.mrb[121].mxu1 }
 0x248   : > { %v2228_v61 = vadd.f32 %v2227_v39, %v2226_v37  ;;  %v2316_v58 = vadd.f32 %v2315_v52, %v2314_v56  ;;  %v2229_v22 = vpop.f32.mrb[106].mxu0  ;;  %v2317_v60 = vpop.f32.mrb[122].mxu1  ;;  %2395 = vmatmul.mubr.msk.bf16.gmra.mrb[128].mxu0 %vm1715_vm0, %v1669_v50 }
 0x249   : > { %v2230_v16 = vpop.f32.mrb[107].mxu0  ;;  %v2318_v45 = vpop.f32.mrb[123].mxu1 }
 0x24a   : > { %v1614_v0 = vadd.f32 %v2316_v58, %v1453_v54  ;;  %v2231_v18 = vadd.f32 %v2230_v16, %v2229_v22  ;;  %v2319_v44 = vadd.f32 %v2318_v45, %v2317_v60  ;;  %v1485_v63 = vadd.f32 %v2228_v61, %v3118_v11 }
 0x24c   : > { %v1617_v46 = vadd.f32 %v2319_v44, %v1456_v34  ;;  %v1488_v37 = vadd.f32 %v2231_v18, %v3118_v11 }
 0x24e   : > { %v1670_v51 = vpack.c.bf16 %v1617_v46, %v1614_v0  ;;  %v2232_v55 = vpop.f32.mrb[108].mxu0  ;;  %v2320_v4 = vpop.f32.mrb[124].mxu1  ;;  %v3231_v46 = vld [vmem:[%s3311_s6] ss:$0 sm:$0xff] }
 0x24f   : > { %v2233_v33 = vpop.f32.mrb[109].mxu0  ;;  %v2321_v53 = vpop.f32.mrb[125].mxu1 }
 0x250   : > { %v2234_v36 = vadd.f32 %v2233_v33, %v2232_v55  ;;  %v2322_v49 = vadd.f32 %v2321_v53, %v2320_v4  ;;  %v2235_v6 = vpop.f32.mrb[110].mxu0  ;;  %v2323_v7 = vpop.f32.mrb[126].mxu1  ;;  %2398 = vmatprep.mubr.msk.bf16.mxu0 %vm1715_vm0, %v1670_v51 }
 0x251   : > { %v2236_v9 = vpop.f32.mrb[111].mxu0  ;;  %v2324_v14 = vpop.f32.mrb[127].mxu1 }
 0x252   : > { %v1622_v12 = vadd.f32 %v2322_v49, %v1461_v20  ;;  %v2237_v13 = vadd.f32 %v2236_v9, %v2235_v6  ;;  %v2325_v15 = vadd.f32 %v2324_v14, %v2323_v7  ;;  %v1493_v22 = vadd.f32 %v2234_v36, %v3118_v11 }
 0x254   : > { %v1625_v21 = vadd.f32 %v2325_v15, %v1464_v62  ;;  %v1496_v45 = vadd.f32 %v2237_v13, %v3118_v11 }
 0x256   : > { %v1671_v24 = vpack.c.bf16 %v1625_v21, %v1622_v12  ;;  %v2326_v2 = vpop.f32.mrb[128].mxu1 }
 0x257   : > { %v2327_v3 = vpop.f32.mrb[129].mxu1 }
 0x258   : > { %v2328_v26 = vadd.f32 %v2327_v3, %v2326_v2  ;;  %v2329_v5 = vpop.f32.mrb[130].mxu1  ;;  %2399 = vmatmul.mubr.msk.bf16.gmra.mrb[132].mxu0 %vm1715_vm0, %v1671_v24 }
 0x259   : > { %v2330_v27 = vpop.f32.mrb[131].mxu1 }
 0x25a   : > { %v1630_v30 = vadd.f32 %v2328_v26, %v1469_v1  ;;  %v2331_v19 = vadd.f32 %v2330_v27, %v2329_v5 }
 0x25c   : > { %v1633_v31 = vadd.f32 %v2331_v19, %v1472_v29 }
 0x25e   : > { %v1672_v8 = vpack.c.bf16 %v1633_v31, %v1630_v30  ;;  %v2332_v10 = vpop.f32.mrb[132].mxu1 }
 0x25f   : > { %v2333_v43 = vpop.f32.mrb[133].mxu1 }
 0x260   : > { %v2334_v38 = vadd.f32 %v2333_v43, %v2332_v10  ;;  %v2335_v42 = vpop.f32.mrb[134].mxu1  ;;  %2402 = vmatprep.mubr.msk.bf16.mxu0 %vm1715_vm0, %v1672_v8 }
 0x261   : > { %v2336_v17 = vpop.f32.mrb[135].mxu1 }
 0x262   : > { %v1638_v32 = vadd.f32 %v2334_v38, %v1477_v35  ;;  %v2337_v23 = vadd.f32 %v2336_v17, %v2335_v42 }
 0x264   : > { %v1641_v41 = vadd.f32 %v2337_v23, %v1480_v47 }
 0x266   : > { %v1673_v28 = vpack.c.bf16 %v1641_v41, %v1638_v32  ;;  %v2338_v25 = vpop.f32.mrb[136].mxu1 }
 0x267   : > { %v2339_v57 = vpop.f32.mrb[137].mxu1 }
 0x268   : > { %v2340_v48 = vadd.f32 %v2339_v57, %v2338_v25  ;;  %v2341_v50 = vpop.f32.mrb[138].mxu1  ;;  %2403 = vmatmul.mubr.msk.bf16.gmra.mrb[136].mxu0 %vm1715_vm0, %v1673_v28 }
 0x269   : > { %v2342_v40 = vpop.f32.mrb[139].mxu1 }
 0x26a   : > { %v1646_v56 = vadd.f32 %v2340_v48, %v1485_v63  ;;  %v2343_v39 = vadd.f32 %v2342_v40, %v2341_v50 }
 0x26c   : > { %v1649_v52 = vadd.f32 %v2343_v39, %v1488_v37 }
 0x26e   : > { %v1674_v59 = vpack.c.bf16 %v1649_v52, %v1646_v56  ;;  %v2344_v54 = vpop.f32.mrb[140].mxu1 }
 0x26f   : > { %v2345_v58 = vpop.f32.mrb[141].mxu1 }
 0x270   : > { %v2346_v60 = vadd.f32 %v2345_v58, %v2344_v54  ;;  %v2347_v16 = vpop.f32.mrb[142].mxu1  ;;  %2406 = vmatprep.mubr.msk.bf16.mxu0 %vm1715_vm0, %v1674_v59 }
 0x271   : > { %v2348_v61 = vpop.f32.mrb[143].mxu1 }
 0x272   : > { %v1654_v34 = vadd.f32 %v2346_v60, %v1493_v22  ;;  %v2349_v0 = vadd.f32 %v2348_v61, %v2347_v16 }
 0x274   : > { %v1657_v44 = vadd.f32 %v2349_v0, %v1496_v45 }
 0x276   : > { %v1675_v18 = vpack.c.bf16 %v1657_v44, %v1654_v34 }
 0x278   : > { %2407 = vmatmul.mubr.msk.bf16.gmra.mrb[140].mxu0 %vm1715_vm0, %v1675_v18 }
 0x2db   : > { %v2380_v11 = vpop.f32.mrb[112].mxu0 }
 0x2dc   : > { %v1807_v51 = vadd.f32 %v2380_v11, %v3231_v46  ;;  %v1798_v55 = vpop.f32.mrb[113].mxu0 }
 0x2dd   : > { %v1799_v4 = vadd.f32 %v3231_v46, %v1798_v55  ;;  %v2381_v33 = vpop.f32.mrb[114].mxu0 }
 0x2de   : > { %1927 = vst [vmem:[%s3236_s10 + $0x10] sm:$0xff] %v1807_v51  ;;  %v1810_v53 = vadd.f32 %v2381_v33, %v3231_v46  ;;  %v1801_v20 = vpop.f32.mrb[115].mxu0 }
 0x2df   : > { %1925 = vst [vmem:[%s3236_s10] sm:$0xff] %v1799_v4  ;;  %v1802_v36 = vadd.f32 %v3231_v46, %v1801_v20 }
 0x2e0   : > { %1928 = vst [vmem:[%s3236_s10 + $0x18] sm:$0xff] %v1810_v53 }
 0x2e1   : > { %1926 = vst [vmem:[%s3236_s10 + $0x8] sm:$0xff] %v1802_v36 }
 0x2eb   : > { %v2384_v49 = vpop.f32.mrb[116].mxu0 }
 0x2ec   : > { %v1823_v6 = vadd.f32 %v2384_v49, %v3231_v46  ;;  %v1814_v7 = vpop.f32.mrb[117].mxu0 }
 0x2ed   : > { %v1815_v9 = vadd.f32 %v3231_v46, %v1814_v7  ;;  %v2385_v14 = vpop.f32.mrb[118].mxu0 }
 0x2ee   : > { %1931 = vst [vmem:[%s3236_s10 + $0x30] sm:$0xff] %v1823_v6  ;;  %v1826_v62 = vadd.f32 %v2385_v14, %v3231_v46  ;;  %v1817_v12 = vpop.f32.mrb[119].mxu0 }
 0x2ef   : > { %1929 = vst [vmem:[%s3236_s10 + $0x20] sm:$0xff] %v1815_v9  ;;  %v1818_v13 = vadd.f32 %v3231_v46, %v1817_v12 }
 0x2f0   : > { %1932 = vst [vmem:[%s3236_s10 + $0x38] sm:$0xff] %v1826_v62 }
 0x2f1   : > { %1930 = vst [vmem:[%s3236_s10 + $0x28] sm:$0xff] %v1818_v13 }
 0x2fb   : > { %v2388_v15 = vpop.f32.mrb[120].mxu0 }
 0x2fc   : > { %v1839_v21 = vadd.f32 %v2388_v15, %v3231_v46  ;;  %v1830_v24 = vpop.f32.mrb[121].mxu0 }
 0x2fd   : > { %v1831_v2 = vadd.f32 %v3231_v46, %v1830_v24  ;;  %v2389_v3 = vpop.f32.mrb[122].mxu0 }
 0x2fe   : > { %1935 = vst [vmem:[%s3236_s10 + $0x50] sm:$0xff] %v1839_v21  ;;  %v1842_v1 = vadd.f32 %v2389_v3, %v3231_v46  ;;  %v1833_v26 = vpop.f32.mrb[123].mxu0 }
 0x2ff   : > { %1933 = vst [vmem:[%s3236_s10 + $0x40] sm:$0xff] %v1831_v2  ;;  %v1834_v5 = vadd.f32 %v3231_v46, %v1833_v26 }
 0x300   : > { %1936 = vst [vmem:[%s3236_s10 + $0x58] sm:$0xff] %v1842_v1 }
 0x301   : > { %1934 = vst [vmem:[%s3236_s10 + $0x48] sm:$0xff] %v1834_v5 }
 0x30b   : > { %v2392_v27 = vpop.f32.mrb[124].mxu0 }
 0x30c   : > { %v1855_v29 = vadd.f32 %v2392_v27, %v3231_v46  ;;  %v1846_v30 = vpop.f32.mrb[125].mxu0 }
 0x30d   : > { %v1847_v19 = vadd.f32 %v3231_v46, %v1846_v30  ;;  %v2393_v31 = vpop.f32.mrb[126].mxu0 }
 0x30e   : > { %1939 = vst [vmem:[%s3236_s10 + $0x70] sm:$0xff] %v1855_v29  ;;  %v1858_v8 = vadd.f32 %v2393_v31, %v3231_v46  ;;  %v1849_v10 = vpop.f32.mrb[127].mxu0 }
 0x30f   : > { %1937 = vst [vmem:[%s3236_s10 + $0x60] sm:$0xff] %v1847_v19  ;;  %v1850_v43 = vadd.f32 %v3231_v46, %v1849_v10 }
 0x310   : > { %1940 = vst [vmem:[%s3236_s10 + $0x78] sm:$0xff] %v1858_v8 }
 0x311   : > { %1938 = vst [vmem:[%s3236_s10 + $0x68] sm:$0xff] %v1850_v43 }
 0x31b   : > { %v2396_v35 = vpop.f32.mrb[128].mxu0 }
 0x31c   : > { %v1871_v38 = vadd.f32 %v2396_v35, %v3231_v46  ;;  %v1862_v42 = vpop.f32.mrb[129].mxu0 }
 0x31d   : > { %v1863_v17 = vadd.f32 %v3231_v46, %v1862_v42  ;;  %v2397_v47 = vpop.f32.mrb[130].mxu0 }
 0x31e   : > { %1943 = vst [vmem:[%s3236_s10 + $0x90] sm:$0xff] %v1871_v38  ;;  %v1874_v32 = vadd.f32 %v2397_v47, %v3231_v46  ;;  %v1865_v23 = vpop.f32.mrb[131].mxu0 }
 0x31f   : > { %1941 = vst [vmem:[%s3236_s10 + $0x80] sm:$0xff] %v1863_v17  ;;  %v1866_v41 = vadd.f32 %v3231_v46, %v1865_v23 }
 0x320   : > { %1944 = vst [vmem:[%s3236_s10 + $0x98] sm:$0xff] %v1874_v32 }
 0x321   : > { %1942 = vst [vmem:[%s3236_s10 + $0x88] sm:$0xff] %v1866_v41 }
 0x32b   : > { %v2400_v28 = vpop.f32.mrb[132].mxu0 }
 0x32c   : > { %v1887_v25 = vadd.f32 %v2400_v28, %v3231_v46  ;;  %v1878_v57 = vpop.f32.mrb[133].mxu0 }
 0x32d   : > { %v1879_v63 = vadd.f32 %v3231_v46, %v1878_v57  ;;  %v2401_v48 = vpop.f32.mrb[134].mxu0 }
 0x32e   : > { %1947 = vst [vmem:[%s3236_s10 + $0xb0] sm:$0xff] %v1887_v25  ;;  %v1890_v50 = vadd.f32 %v2401_v48, %v3231_v46  ;;  %v1881_v40 = vpop.f32.mrb[135].mxu0 }
 0x32f   : > { %1945 = vst [vmem:[%s3236_s10 + $0xa0] sm:$0xff] %v1879_v63  ;;  %v1882_v37 = vadd.f32 %v3231_v46, %v1881_v40 }
 0x330   : > { %1948 = vst [vmem:[%s3236_s10 + $0xb8] sm:$0xff] %v1890_v50 }
 0x331   : > { %1946 = vst [vmem:[%s3236_s10 + $0xa8] sm:$0xff] %v1882_v37 }
 0x33b   : > { %v2404_v56 = vpop.f32.mrb[136].mxu0 }
 0x33c   : > { %v1903_v39 = vadd.f32 %v2404_v56, %v3231_v46  ;;  %v1894_v52 = vpop.f32.mrb[137].mxu0 }
 0x33d   : > { %v1895_v59 = vadd.f32 %v3231_v46, %v1894_v52  ;;  %v2405_v54 = vpop.f32.mrb[138].mxu0 }
 0x33e   : > { %1951 = vst [vmem:[%s3236_s10 + $0xd0] sm:$0xff] %v1903_v39  ;;  %v1906_v58 = vadd.f32 %v2405_v54, %v3231_v46  ;;  %v1897_v22 = vpop.f32.mrb[139].mxu0 }
 0x33f   : > { %1949 = vst [vmem:[%s3236_s10 + $0xc0] sm:$0xff] %v1895_v59  ;;  %v1898_v60 = vadd.f32 %v3231_v46, %v1897_v22 }
 0x340   : > { %1952 = vst [vmem:[%s3236_s10 + $0xd8] sm:$0xff] %v1906_v58 }
 0x341   : > { %1950 = vst [vmem:[%s3236_s10 + $0xc8] sm:$0xff] %v1898_v60 }
 0x34b   : > { %v2408_v16 = vpop.f32.mrb[140].mxu0 }
 0x34c   : > { %v1919_v61 = vadd.f32 %v2408_v16, %v3231_v46  ;;  %v1910_v45 = vpop.f32.mrb[141].mxu0 }
 0x34d   : > { %v1911_v34 = vadd.f32 %v3231_v46, %v1910_v45  ;;  %v2409_v0 = vpop.f32.mrb[142].mxu0 }
 0x34e   : > { %1955 = vst [vmem:[%s3236_s10 + $0xf0] sm:$0xff] %v1919_v61  ;;  %v1922_v44 = vadd.f32 %v2409_v0, %v3231_v46  ;;  %v1913_v18 = vpop.f32.mrb[143].mxu0 }
 0x34f   : > { %1953 = vst [vmem:[%s3236_s10 + $0xe0] sm:$0xff] %v1911_v34  ;;  %v1914_v11 = vadd.f32 %v3231_v46, %v1913_v18 }
 0x350   : > { %1956 = vst [vmem:[%s3236_s10 + $0xf8] sm:$0xff] %v1922_v44 }
 0x351   : > { %1954 = vst [vmem:[%s3236_s10 + $0xe8] sm:$0xff] %v1914_v11 }
 0x352 PF: > { %s17_s24 = sadd.s32 1, %s2541_s24  }
 0x353   : > { %p14_p4 = scmp.ge.s32.totalorder %s17_s24, 4  }
 0x355   :  { %16 = sbr.rel (!%p14_p4) target bundleno = 1 (0x1), region = 78 }

</bundles_post_ra>
